<compile_context>
chip_gen: v5e
topology: v5e:2x2
jax: 0.10.0
libtpu: 0.0.40
codegen_flags: <defaults>
</compile_context>

<pallas_src>
import math

import jax
import jax.numpy as jnp
import numpy as np
from jax import lax
from jax.experimental import pallas as pl
from jax.experimental.pallas import tpu as pltpu

# ----------------------------- model sizes -----------------------------------
N_NODES = 64          # total graph nodes
EMBED = 32            # embedding_size (raw node-feature dim)
HIDDEN = 32           # hidden_size
NUM_HEADS = 4
HEAD_DIM = HIDDEN // NUM_HEADS
MLP_HIDDEN = 16       # mlp_hidden_size
NUM_BASES = 8         # num_temporal_bases
S = 16                # number of query nodes (index_obtains)
LANES = 128
LN_EPS = 1e-5
OUT_ROWS = 2 * S      # output slab: rows 0..S-1 = pred (lane-replicated), rows S..2S-1 = fused

# Temporal-encoding frequencies (PyTorch: sin(t / 10000**(2i/B)), cos(t / 10000**(2i + 1/B))).
_I = np.arange(NUM_BASES, dtype=np.float64)
_SIN_INV_FREQ = (10000.0 ** (-(2.0 * _I) / NUM_BASES)).astype(np.float32)
_COS_INV_FREQ = (10000.0 ** (-(2.0 * _I + 1.0 / NUM_BASES))).astype(np.float32)

# ----------------------- dynamic (per-instance) slab layout -------------------
_DYN_X = 0                       # (N_NODES, EMBED)   raw node features
_DYN_SEL = _DYN_X + N_NODES      # (S, N_NODES)       one-hot row gather for index_obtains
_DYN_TRIG = _DYN_SEL + S         # (1, 2*NUM_BASES)   [sin | cos] temporal bases
DYN_ROWS = _DYN_TRIG + 8         # 88 rows (8-aligned for the f32 (8,128) tile)

# ----------------------- static (weight) slab layout ---------------------------
# Bias / LayerNorm / small-vector bank: one row each inside a single (16,128) band.
_BANK = {
    "b_attr": (0, HIDDEN), "b_temp": (1, HIDDEN), "bqkv": (2, 3 * HIDDEN),
    "b1": (3, 4 * HIDDEN), "b2": (4, HIDDEN),
    "g1": (5, HIDDEN), "be1": (6, HIDDEN), "g2": (7, HIDDEN), "be2": (8, HIDDEN),
    "bm1": (9, MLP_HIDDEN), "bm2_rep": (10, LANES),
}


def _build_layout():
    segs = [
        ("w_attr", EMBED, HIDDEN),
        ("bank", 16, LANES),                      # bias / LN bank (11 rows used)
        ("w_trig", 2 * NUM_BASES, HIDDEN),        # rows 0..B-1 = sin rows, B..2B-1 = cos rows
        ("wqkv", HIDDEN, 3 * HIDDEN),
        ("w1", HIDDEN, 4 * HIDDEN),
        ("w2", 4 * HIDDEN, HIDDEN),
        ("wm1", HIDDEN, MLP_HIDDEN),
        ("wm2_rep", MLP_HIDDEN, LANES),           # final weight lane-replicated -> lane-dense pred
        ("adj", N_NODES, N_NODES),                # weighted adjacency (model data, call-invariant)
        ("rrep", NUM_HEADS * S, S),               # vstack of 4 x eye(S): sublane row replication
        ("chd", NUM_HEADS * S, HIDDEN),           # [h*S+j, h*HD+d] = 1: head block select / spread
        ("eyepad", HIDDEN, LANES),                # [eye(H) | 0]: pads fused to full 128 lanes
    ]
    layout, off = {}, 0
    for name, rows, cols in segs:
        layout[name] = (off, rows, cols)
        off += ((rows + 15) // 16) * 16           # bf16 sublane tile (16,128) alignment
    return layout, off


_SEG, SLAB_ROWS = _build_layout()                 # SLAB_ROWS = 528


def pack_params(params):
    """Pack all weights + graph/constant matrices into one bf16 (SLAB_ROWS, 128) slab."""
    rrep = np.tile(np.eye(S, dtype=np.float32), (NUM_HEADS, 1))
    chd = np.zeros((NUM_HEADS * S, HIDDEN), np.float32)
    for h in range(NUM_HEADS):
        chd[h * S:(h + 1) * S, h * HEAD_DIM:(h + 1) * HEAD_DIM] = 1.0
    eyepad = np.zeros((HIDDEN, LANES), np.float32)
    eyepad[:, :HIDDEN] = np.eye(HIDDEN, dtype=np.float32)

    bank = jnp.zeros((16, LANES), jnp.float32)
    bank_vals = {
        "b_attr": params["b_attr"], "b_temp": params["b_temp"], "bqkv": params["bqkv"],
        "b1": params["b1"], "b2": params["b2"], "g1": params["g1"], "be1": params["be1"],
        "g2": params["g2"], "be2": params["be2"], "bm1": params["bm1"],
        "bm2_rep": jnp.tile(params["bm2"], (1, LANES)),
    }
    for name, val in bank_vals.items():
        r, w = _BANK[name]
        bank = bank.at[r, :w].set(val.reshape(-1).astype(jnp.float32))

    w_trig = jnp.concatenate([params["w_temp"][0::2, :], params["w_temp"][1::2, :]], axis=0)
    entries = {
        "w_attr": params["w_attr"], "bank": bank, "w_trig": w_trig,
        "wqkv": params["wqkv"], "w1": params["w1"], "w2": params["w2"],
        "wm1": params["wm1"], "wm2_rep": jnp.tile(params["wm2"], (1, LANES)),
        "adj": params["adj"], "rrep": jnp.asarray(rrep), "chd": jnp.asarray(chd),
        "eyepad": jnp.asarray(eyepad),
    }
    slab = jnp.zeros((SLAB_ROWS, LANES), jnp.float32)
    for name, val in entries.items():
        off, rows, cols = _SEG[name]
        assert val.shape == (rows, cols), (name, val.shape, (rows, cols))
        slab = slab.at[off:off + rows, :cols].set(val.astype(jnp.float32))
    return slab.astype(jnp.bfloat16)


def quantize_params(params):
    """bf16-round every tensor (matches the bf16 weight slab the kernel consumes)."""
    return {k: v.astype(jnp.bfloat16).astype(jnp.float32) for k, v in params.items()}


# --------------------------------- kernel -------------------------------------
def _temporal_spatial_kernel(dyn_ref, slab_ref, out_ref):
    f32 = jnp.float32

    def seg(name):
        off, rows, cols = _SEG[name]
        return slab_ref[off:off + rows, :cols].astype(f32)    # bf16 -> f32 at load

    def dot(a, b):
        return jnp.dot(a, b, preferred_element_type=f32)

    def dot_nt(a, b):   # a @ b.T, contracting last dims (no explicit transpose)
        return lax.dot_general(a, b, (((1,), (1,)), ((), ())), preferred_element_type=f32)

    bank = seg("bank")                                         # (16,128) f32, single upcast

    def brow(name):
        r, w = _BANK[name]
        return bank[r:r + 1, :w]

    # ---- dynamic per-instance inputs (one slab view) -------------------------
    x = dyn_ref[_DYN_X:_DYN_X + N_NODES, :EMBED]               # (N, E)
    sel = dyn_ref[_DYN_SEL:_DYN_SEL + S, :N_NODES]             # (S, N) one-hot gather
    trig = dyn_ref[_DYN_TRIG:_DYN_TRIG + 1, :2 * NUM_BASES]    # (1, 2B) [sin | cos]

    # ---- temporal embedding for all nodes -------------------------------------
    attr = jnp.maximum(dot(x, seg("w_attr")) + brow("b_attr"), 0.0)      # (N, H)
    temp = jnp.maximum(dot(trig, seg("w_trig")) + brow("b_temp"), 0.0)   # (1, H)
    emb = attr + temp                                                     # (N, H)

    # ---- spatial aggregation: fused intra + inter -----------------------------
    adj = seg("adj")                                           # (N, N)
    A = dot(sel, adj)                                          # adj[idx]   (S, N)
    nz = (A != 0.0).astype(f32)                                # neighbor indicator
    deg = jnp.maximum(jnp.sum(nz, axis=1, keepdims=True), 1.0)  # guard deg >= 1 (ring => identical)
    sub = dot(sel, emb)                                        # emb[idx]   (S, H)
    x0 = dot(A - nz, emb) * (1.0 / deg) + sub                  # (S, H)

    # sub-graph edge mask replicated 4x along lanes (one copy per head)
    rrep = seg("rrep")                                         # (4S, S)
    m_rep = (dot_nt(nz, dot(rrep, sel)) > 0.5).astype(f32)     # (S, 4S): block h = M
    M = m_rep[:, :S]                                           # (S, S)

    # ---- transformer block: flattened multi-head edge attention ---------------
    qkv = dot(x0, seg("wqkv")) + brow("bqkv")                  # (S, 3H)
    q = qkv[:, :HIDDEN] * (1.0 / math.sqrt(HEAD_DIM))          # scale folded into q once
    k = qkv[:, HIDDEN:2 * HIDDEN]
    v = qkv[:, 2 * HIDDEN:]

    chd = seg("chd")                                           # (4S, H) per-head block selector
    k_cat = dot(rrep, k) * chd                                 # row h*S+j = head-h slice of k[j]
    scores = dot_nt(q, k_cat)                                  # (S, 4S): block h = q_h k_h^T/sqrt(d)
    e = jnp.exp(scores) * m_rep                                # all heads: ONE exp + ONE mask mult
    w_pre = dot(e, chd)                                        # (S, H): per-head row-sums, spread
    zrow = jnp.sum(w_pre, axis=0, keepdims=True)               # (1, H): per-head global denom Z_h
    inv_z = pl.reciprocal(jnp.where(zrow == 0.0, 1.0, zrow), approx=True)
    attn_out = w_pre * inv_z * dot(M, v)                       # == per-head (rowsum/Z_h)*(M @ v_h)
    # dropout(p=0.3) -> identity (eval mode)

    def layer_norm(y, g, b):
        mu = jnp.mean(y, axis=-1, keepdims=True)
        var = jnp.mean((y - mu) ** 2, axis=-1, keepdims=True)
        return (y - mu) * lax.rsqrt(var + LN_EPS) * g + b

    x1 = layer_norm(x0 + attn_out, brow("g1"), brow("be1"))
    ffn = dot(jnp.maximum(dot(x1, seg("w1")) + brow("b1"), 0.0), seg("w2")) + brow("b2")
    fused = layer_norm(x1 + ffn, brow("g2"), brow("be2"))

    # ---- MLP head; both outputs in one lane-dense (2S, 128) slab --------------
    h1 = jnp.maximum(dot(fused, seg("wm1")) + brow("bm1"), 0.0)
    out_ref[0:S, :] = dot(h1, seg("wm2_rep")) + brow("bm2_rep")   # pred: all 128 lanes identical
    out_ref[S:OUT_ROWS, :] = dot(fused, seg("eyepad"))            # fused in lanes [0, H), zeros after


# --------------------------------- wrappers ------------------------------------
def _build_dyn_slab(x_b, ts_b, idx_b):
    b = x_b.shape[0]
    trig = jnp.concatenate([jnp.sin(ts_b[:, None] * _SIN_INV_FREQ),
                            jnp.cos(ts_b[:, None] * _COS_INV_FREQ)], axis=1)   # (B, 2B_bases)
    sel = jax.nn.one_hot(idx_b, N_NODES, dtype=jnp.float32)                    # (B, S, N)
    dyn = jnp.zeros((b, DYN_ROWS, LANES), jnp.float32)
    dyn = dyn.at[:, _DYN_X:_DYN_X + N_NODES, :EMBED].set(x_b)
    dyn = dyn.at[:, _DYN_SEL:_DYN_SEL + S, :N_NODES].set(sel)
    dyn = dyn.at[:, _DYN_TRIG, :2 * NUM_BASES].set(trig)
    return dyn


@jax.jit
def _forward_batched(x_b, ts_b, idx_b, slab):
    """B independent (x, timestamp, index_obtains) instances, shared weights, one pallas_call."""
    b = x_b.shape[0]
    dyn = _build_dyn_slab(x_b, ts_b.astype(jnp.float32), idx_b.astype(jnp.int32))
    out = pl.pallas_call(
        _temporal_spatial_kernel,
        out_shape=jax.ShapeDtypeStruct((b, OUT_ROWS, LANES), jnp.float32),
        grid=(b,),
        in_specs=[
            # per-instance dynamic slab: one block per grid step (leading dim squeezed)
            pl.BlockSpec((None, DYN_ROWS, LANES), lambda i: (i, 0, 0)),
            # weight slab: constant block index -> stays VMEM-resident across the whole grid
            pl.BlockSpec((SLAB_ROWS, LANES), lambda i: (0, 0)),
        ],
        out_specs=pl.BlockSpec((None, OUT_ROWS, LANES), lambda i: (i, 0, 0)),
        compiler_params=pltpu.CompilerParams(dimension_semantics=("parallel",)),
    )(dyn, slab)
    return out[:, :S, 0:1], out[:, S:OUT_ROWS, :HIDDEN]        # pred (B,S,1), fused (B,S,H)


def temporal_spatial_forward(x, node_indices, timestamp, relations, index_obtains, params, slab):
    """Mirrors TemporalSpatialModel.forward; node_indices/relations are unused (as in PyTorch)."""
    del node_indices, relations, params
    pred, fused = _forward_batched(x[None], jnp.asarray(timestamp, jnp.float32)[None],
                                   jnp.asarray(index_obtains, jnp.int32)[None], slab)
    # TODO(synk): the PyTorch branch that drops neighbor-less query nodes (dynamic valid_indices /
    # empty-edge early return) has no static-shape equivalent; the ring edge guarantees >=1 neighbor.
    return pred[0], fused, None, index_obtains


# ------------------------------- reference -------------------------------------
def _reference(x, timestamp, index_obtains, params):
    """Pure-JAX mirror of the TemporalSpatialModel math (uses bf16-rounded params)."""
    hp = jax.lax.Precision.HIGHEST
    mm = lambda a, b: jnp.dot(a, b, precision=hp)
    t = jnp.asarray(timestamp, jnp.float32)
    attr = jnp.maximum(mm(x, params["w_attr"]) + params["b_attr"], 0.0)
    bases = jnp.stack([jnp.sin(t * _SIN_INV_FREQ),
                       jnp.cos(t * _COS_INV_FREQ)], axis=1).reshape(1, -1)  # interleaved (torch .view)
    temp = jnp.maximum(mm(bases, params["w_temp"]) + params["b_temp"], 0.0)
    emb = attr + temp

    idx = index_obtains
    adj = params["adj"]
    A = adj[idx]
    sub = emb[idx]
    M = (adj[idx][:, idx] != 0.0).astype(jnp.float32)
    nz = (A != 0.0).astype(jnp.float32)
    deg = nz.sum(1, keepdims=True)
    x0 = mm(A, emb) / deg + sub - mm(nz, emb) / deg

    qkv = mm(x0, params["wqkv"]) + params["bqkv"]
    q, k, v = qkv[:, :HIDDEN], qkv[:, HIDDEN:2 * HIDDEN], qkv[:, 2 * HIDDEN:]
    scale = 1.0 / math.sqrt(HEAD_DIM)
    outs = []
    for h in range(NUM_HEADS):
        lo, hi = h * HEAD_DIM, (h + 1) * HEAD_DIM
        e = jnp.exp(mm(q[:, lo:hi], k[:, lo:hi].T) * scale) * M
        z = jnp.where(e.sum() == 0.0, 1.0, e.sum())
        outs.append((e.sum(1, keepdims=True) / z) * mm(M, v[:, lo:hi]))
    attn = jnp.concatenate(outs, -1)

    def ln(y, g, b):
        mu = y.mean(-1, keepdims=True)
        var = ((y - mu) ** 2).mean(-1, keepdims=True)
        return (y - mu) * jax.lax.rsqrt(var + LN_EPS) * g + b

    x1 = ln(x0 + attn, params["g1"], params["be1"])
    ffn = mm(jnp.maximum(mm(x1, params["w1"]) + params["b1"], 0.0), params["w2"]) + params["b2"]
    fused = ln(x1 + ffn, params["g2"], params["be2"])
    pred = mm(jnp.maximum(mm(fused, params["wm1"]) + params["bm1"], 0.0),
              params["wm2"]) + params["bm2"]
    return pred, fused


# ---------------------------------- init ---------------------------------------
def init_params(key):
    keys = jax.random.split(key, 16)

    def linear(kw, kb, fan_in, fan_out):
        bound = 1.0 / math.sqrt(fan_in)              # PyTorch nn.Linear default init
        w = jax.random.uniform(kw, (fan_in, fan_out), jnp.float32, -bound, bound)
        b = jax.random.uniform(kb, (1, fan_out), jnp.float32, -bound, bound)
        return w, b

    w_attr, b_attr = linear(keys[0], keys[1], EMBED, HIDDEN)
    w_temp, b_temp = linear(keys[2], keys[3], 2 * NUM_BASES, HIDDEN)
    wqkv, bqkv = linear(keys[4], keys[5], HIDDEN, 3 * HIDDEN)
    w1, b1 = linear(keys[6], keys[7], HIDDEN, 4 * HIDDEN)
    w2, b2 = linear(keys[8], keys[9], 4 * HIDDEN, HIDDEN)
    wm1, bm1 = linear(keys[10], keys[11], HIDDEN, MLP_HIDDEN)
    wm2, bm2 = linear(keys[12], keys[13], MLP_HIDDEN, 1)

    # Sparse weighted adjacency (~10% density) plus a ring so every node has >=1 neighbor.
    rand = jax.random.uniform(keys[14], (N_NODES, N_NODES))
    weights = jax.random.uniform(keys[15], (N_NODES, N_NODES), jnp.float32, 0.1, 1.0)
    adj = jnp.where(rand < 0.1, weights, 0.0)
    ring = jnp.roll(jnp.eye(N_NODES, dtype=jnp.float32), 1, axis=1)   # edge i -> i+1
    adj = jnp.where(ring > 0.0, weights, adj).astype(jnp.float32)

    return dict(
        adj=adj,
        w_attr=w_attr, b_attr=b_attr, w_temp=w_temp, b_temp=b_temp,
        wqkv=wqkv, bqkv=bqkv,
        w1=w1, b1=b1, w2=w2, b2=b2,
        g1=jnp.ones((1, HIDDEN), jnp.float32), be1=jnp.zeros((1, HIDDEN), jnp.float32),
        g2=jnp.ones((1, HIDDEN), jnp.float32), be2=jnp.zeros((1, HIDDEN), jnp.float32),
        wm1=wm1, bm1=bm1, wm2=wm2, bm2=bm2,
    )


if __name__ == "__main__":
    key = jax.random.PRNGKey(0)
    k_x, k_par = jax.random.split(key)
    params = init_params(k_par)
    slab = pack_params(params)                 # bf16 weight slab consumed by the kernel
    qparams = quantize_params(params)          # bf16-rounded params for the f32 reference

    # batched run: B instances (different features / timestamps / query sets), shared weights
    B = 4
    x_b = jax.random.normal(k_x, (B, N_NODES, EMBED), jnp.float32)
    ts_b = jnp.asarray([3.0, 7.5, 42.0, 123.0], jnp.float32)
    idx_b = jnp.stack([(jnp.arange(S, dtype=jnp.int32) * 3 + 5 * i) % N_NODES for i in range(B)])

    pred_b, fused_b = _forward_batched(x_b, ts_b, idx_b, slab)
    jax.block_until_ready((pred_b, fused_b))

    # 2e-3 tolerance covers the approx-reciprocal attention denominator path.
    for i in range(B):
        ref_pred, ref_fused = _reference(x_b[i], ts_b[i], idx_b[i], qparams)
        np.testing.assert_allclose(np.asarray(pred_b[i]), np.asarray(ref_pred), rtol=2e-3, atol=2e-3)
        np.testing.assert_allclose(np.asarray(fused_b[i]), np.asarray(ref_fused), rtol=2e-3, atol=2e-3)

    # single-instance, PyTorch-signature path
    prediction, fused, _, valid_indices = temporal_spatial_forward(
        x_b[0], node_indices=None, timestamp=ts_b[0], relations=None,
        index_obtains=idx_b[0], params=params, slab=slab)
    jax.block_until_ready((prediction, fused))
    assert prediction.shape == (S, 1) and fused.shape == (1, S, HIDDEN)
    print("KERNEL_OK")
</pallas_src>

<mosaic_0001>
module attributes {stable_mosaic.version = 11 : i64} {
  func.func @_temporal_spatial_kernel(%arg0: i32, %arg1: memref<1x88x128xf32, #tpu.memory_space<vmem>>, %arg2: memref<528x128xbf16, #tpu.memory_space<vmem>>, %arg3: memref<1x32x128xf32, #tpu.memory_space<vmem>>) attributes {dimension_semantics = [#tpu.dimension_semantics<parallel>], iteration_bounds = array<i64: 4>, scalar_prefetch = 0 : i64, scratch_operands = 0 : i64, tpu.core_type = #tpu.core_type<tc>, window_params = [{transform_indices = @transform_0, window_bounds = array<i64: 1, 88, 128>}, {pipeline_mode = #tpu.pipeline_mode<synchronous>, transform_indices = @transform_1, window_bounds = array<i64: 528, 128>}, {transform_indices = @transform_2, window_bounds = array<i64: 1, 32, 128>}]} {
    %c32 = arith.constant 32 : index
    %c0 = arith.constant 0 : index
    %0 = vector.load %arg2[%c32, %c0] : memref<528x128xbf16, #tpu.memory_space<vmem>>, vector<16x128xbf16>
    %1 = arith.extf %0 : vector<16x128xbf16> to vector<16x128xf32>
    %c0_0 = arith.constant 0 : index
    %c0_1 = arith.constant 0 : index
    %c0_2 = arith.constant 0 : index
    %2 = vector.load %arg1[%c0_0, %c0_1, %c0_2] : memref<1x88x128xf32, #tpu.memory_space<vmem>>, vector<1x64x32xf32>
    %3 = vector.shape_cast %2 : vector<1x64x32xf32> to vector<64x32xf32>
    %c0_3 = arith.constant 0 : index
    %c64 = arith.constant 64 : index
    %c0_4 = arith.constant 0 : index
    %4 = vector.load %arg1[%c0_3, %c64, %c0_4] : memref<1x88x128xf32, #tpu.memory_space<vmem>>, vector<1x16x64xf32>
    %5 = vector.shape_cast %4 : vector<1x16x64xf32> to vector<16x64xf32>
    %c0_5 = arith.constant 0 : index
    %c80 = arith.constant 80 : index
    %c0_6 = arith.constant 0 : index
    %6 = vector.load %arg1[%c0_5, %c80, %c0_6] : memref<1x88x128xf32, #tpu.memory_space<vmem>>, vector<1x1x16xf32>
    %7 = vector.shape_cast %6 : vector<1x1x16xf32> to vector<1x16xf32>
    %c0_7 = arith.constant 0 : index
    %c0_8 = arith.constant 0 : index
    %8 = vector.load %arg2[%c0_7, %c0_8] : memref<528x128xbf16, #tpu.memory_space<vmem>>, vector<32x32xbf16>
    %9 = arith.extf %8 : vector<32x32xbf16> to vector<32x32xf32>
    %cst = arith.constant dense<0.000000e+00> : vector<64x32xf32>
    %10 = tpu.matmul %3, %9, %cst {dimension_numbers = #tpu.dot_dimension_numbers<[1], [0], [0], [1], [0, 0, 1, 1], [], []>} : vector<64x32xf32>, vector<32x32xf32>, vector<64x32xf32> -> vector<64x32xf32>
    %11 = vector.extract_strided_slice %1 {offsets = [0, 0], sizes = [1, 32], strides = [1, 1]} : vector<16x128xf32> to vector<1x32xf32>
    %12 = vector.broadcast %11 : vector<1x32xf32> to vector<64x32xf32>
    %13 = arith.addf %10, %12 : vector<64x32xf32>
    %cst_9 = arith.constant 0.000000e+00 : f32
    %14 = vector.broadcast %cst_9 : f32 to vector<64x32xf32>
    %15 = arith.maximumf %13, %14 : vector<64x32xf32>
    %c48 = arith.constant 48 : index
    %c0_10 = arith.constant 0 : index
    %16 = vector.load %arg2[%c48, %c0_10] : memref<528x128xbf16, #tpu.memory_space<vmem>>, vector<16x32xbf16>
    %17 = arith.extf %16 : vector<16x32xbf16> to vector<16x32xf32>
    %cst_11 = arith.constant dense<0.000000e+00> : vector<1x32xf32>
    %18 = tpu.matmul %7, %17, %cst_11 {dimension_numbers = #tpu.dot_dimension_numbers<[1], [0], [0], [1], [0, 0, 1, 1], [], []>} : vector<1x16xf32>, vector<16x32xf32>, vector<1x32xf32> -> vector<1x32xf32>
    %19 = vector.extract_strided_slice %1 {offsets = [1, 0], sizes = [1, 32], strides = [1, 1]} : vector<16x128xf32> to vector<1x32xf32>
    %20 = arith.addf %18, %19 : vector<1x32xf32>
    %cst_12 = arith.constant 0.000000e+00 : f32
    %21 = vector.broadcast %cst_12 : f32 to vector<1x32xf32>
    %22 = arith.maximumf %20, %21 : vector<1x32xf32>
    %23 = vector.broadcast %22 : vector<1x32xf32> to vector<64x32xf32>
    %24 = arith.addf %15, %23 : vector<64x32xf32>
    %c304 = arith.constant 304 : index
    %c0_13 = arith.constant 0 : index
    %25 = vector.load %arg2[%c304, %c0_13] : memref<528x128xbf16, #tpu.memory_space<vmem>>, vector<64x64xbf16>
    %26 = arith.extf %25 : vector<64x64xbf16> to vector<64x64xf32>
    %cst_14 = arith.constant dense<0.000000e+00> : vector<16x64xf32>
    %27 = tpu.matmul %5, %26, %cst_14 {dimension_numbers = #tpu.dot_dimension_numbers<[1], [0], [0], [1], [0, 0, 1, 1], [], []>} : vector<16x64xf32>, vector<64x64xf32>, vector<16x64xf32> -> vector<16x64xf32>
    %cst_15 = arith.constant 0.000000e+00 : f32
    %28 = vector.broadcast %cst_15 : f32 to vector<16x64xf32>
    %29 = arith.cmpf one, %27, %28 : vector<16x64xf32>
    %30 = arith.extui %29 : vector<16x64xi1> to vector<16x64xi32>
    %31 = arith.sitofp %30 : vector<16x64xi32> to vector<16x64xf32>
    %cst_16 = arith.constant dense<0.000000e+00> : vector<16xf32>
    %32 = vector.multi_reduction <add>, %31, %cst_16 [1] : vector<16x64xf32> to vector<16xf32>
    %33 = vector.shape_cast %32 : vector<16xf32> to vector<16x1xf32>
    %cst_17 = arith.constant 1.000000e+00 : f32
    %34 = vector.broadcast %cst_17 : f32 to vector<16x1xf32>
    %35 = arith.maximumf %33, %34 : vector<16x1xf32>
    %cst_18 = arith.constant dense<0.000000e+00> : vector<16x32xf32>
    %36 = tpu.matmul %5, %24, %cst_18 {dimension_numbers = #tpu.dot_dimension_numbers<[1], [0], [0], [1], [0, 0, 1, 1], [], []>} : vector<16x64xf32>, vector<64x32xf32>, vector<16x32xf32> -> vector<16x32xf32>
    %37 = arith.subf %27, %31 : vector<16x64xf32>
    %cst_19 = arith.constant dense<0.000000e+00> : vector<16x32xf32>
    %38 = tpu.matmul %37, %24, %cst_19 {dimension_numbers = #tpu.dot_dimension_numbers<[1], [0], [0], [1], [0, 0, 1, 1], [], []>} : vector<16x64xf32>, vector<64x32xf32>, vector<16x32xf32> -> vector<16x32xf32>
    %cst_20 = arith.constant 1.000000e+00 : f32
    %39 = vector.broadcast %cst_20 : f32 to vector<16x1xf32>
    %40 = arith.divf %39, %35 : vector<16x1xf32>
    %41 = vector.broadcast %40 : vector<16x1xf32> to vector<16x32xf32>
    %42 = arith.mulf %38, %41 : vector<16x32xf32>
    %43 = arith.addf %42, %36 : vector<16x32xf32>
    %c368 = arith.constant 368 : index
    %c0_21 = arith.constant 0 : index
    %44 = vector.load %arg2[%c368, %c0_21] : memref<528x128xbf16, #tpu.memory_space<vmem>>, vector<64x16xbf16>
    %45 = arith.extf %44 : vector<64x16xbf16> to vector<64x16xf32>
    %cst_22 = arith.constant dense<0.000000e+00> : vector<64x64xf32>
    %46 = tpu.matmul %45, %5, %cst_22 {dimension_numbers = #tpu.dot_dimension_numbers<[1], [0], [0], [1], [0, 0, 1, 1], [], []>} : vector<64x16xf32>, vector<16x64xf32>, vector<64x64xf32> -> vector<64x64xf32>
    %cst_23 = arith.constant dense<0.000000e+00> : vector<16x64xf32>
    %47 = tpu.matmul %31, %46, %cst_23 {dimension_numbers = #tpu.dot_dimension_numbers<[1], [1], [0], [0], [0, 0, 1, 0], [], []>} : vector<16x64xf32>, vector<64x64xf32>, vector<16x64xf32> -> vector<16x64xf32>
    %cst_24 = arith.constant 5.000000e-01 : f32
    %48 = vector.broadcast %cst_24 : f32 to vector<16x64xf32>
    %49 = arith.cmpf ogt, %47, %48 : vector<16x64xf32>
    %50 = arith.extui %49 : vector<16x64xi1> to vector<16x64xi32>
    %51 = arith.sitofp %50 : vector<16x64xi32> to vector<16x64xf32>
    %52 = vector.extract_strided_slice %51 {offsets = [0, 0], sizes = [16, 16], strides = [1, 1]} : vector<16x64xf32> to vector<16x16xf32>
    %c64_25 = arith.constant 64 : index
    %c0_26 = arith.constant 0 : index
    %53 = vector.load %arg2[%c64_25, %c0_26] : memref<528x128xbf16, #tpu.memory_space<vmem>>, vector<32x96xbf16>
    %54 = arith.extf %53 : vector<32x96xbf16> to vector<32x96xf32>
    %cst_27 = arith.constant dense<0.000000e+00> : vector<16x96xf32>
    %55 = tpu.matmul %43, %54, %cst_27 {dimension_numbers = #tpu.dot_dimension_numbers<[1], [0], [0], [1], [0, 0, 1, 1], [], []>} : vector<16x32xf32>, vector<32x96xf32>, vector<16x96xf32> -> vector<16x96xf32>
    %56 = vector.extract_strided_slice %1 {offsets = [2, 0], sizes = [1, 96], strides = [1, 1]} : vector<16x128xf32> to vector<1x96xf32>
    %57 = vector.broadcast %56 : vector<1x96xf32> to vector<16x96xf32>
    %58 = arith.addf %55, %57 : vector<16x96xf32>
    %59 = vector.extract_strided_slice %58 {offsets = [0, 0], sizes = [16, 32], strides = [1, 1]} : vector<16x96xf32> to vector<16x32xf32>
    %cst_28 = arith.constant 0.353553385 : f32
    %60 = vector.broadcast %cst_28 : f32 to vector<16x32xf32>
    %61 = arith.mulf %59, %60 : vector<16x32xf32>
    %62 = vector.extract_strided_slice %58 {offsets = [0, 32], sizes = [16, 32], strides = [1, 1]} : vector<16x96xf32> to vector<16x32xf32>
    %63 = vector.extract_strided_slice %58 {offsets = [0, 64], sizes = [16, 32], strides = [1, 1]} : vector<16x96xf32> to vector<16x32xf32>
    %c432 = arith.constant 432 : index
    %c0_29 = arith.constant 0 : index
    %64 = vector.load %arg2[%c432, %c0_29] : memref<528x128xbf16, #tpu.memory_space<vmem>>, vector<64x32xbf16>
    %65 = arith.extf %64 : vector<64x32xbf16> to vector<64x32xf32>
    %cst_30 = arith.constant dense<0.000000e+00> : vector<64x32xf32>
    %66 = tpu.matmul %45, %62, %cst_30 {dimension_numbers = #tpu.dot_dimension_numbers<[1], [0], [0], [1], [0, 0, 1, 1], [], []>} : vector<64x16xf32>, vector<16x32xf32>, vector<64x32xf32> -> vector<64x32xf32>
    %67 = arith.mulf %66, %65 : vector<64x32xf32>
    %cst_31 = arith.constant dense<0.000000e+00> : vector<16x64xf32>
    %68 = tpu.matmul %61, %67, %cst_31 {dimension_numbers = #tpu.dot_dimension_numbers<[1], [1], [0], [0], [0, 0, 1, 0], [], []>} : vector<16x32xf32>, vector<64x32xf32>, vector<16x64xf32> -> vector<16x64xf32>
    %69 = math.exp %68 : vector<16x64xf32>
    %70 = arith.mulf %69, %51 : vector<16x64xf32>
    %cst_32 = arith.constant dense<0.000000e+00> : vector<16x32xf32>
    %71 = tpu.matmul %70, %65, %cst_32 {dimension_numbers = #tpu.dot_dimension_numbers<[1], [0], [0], [1], [0, 0, 1, 1], [], []>} : vector<16x64xf32>, vector<64x32xf32>, vector<16x32xf32> -> vector<16x32xf32>
    %cst_33 = arith.constant dense<0.000000e+00> : vector<32xf32>
    %72 = vector.multi_reduction <add>, %71, %cst_33 [0] : vector<16x32xf32> to vector<32xf32>
    %73 = vector.shape_cast %72 : vector<32xf32> to vector<1x32xf32>
    %cst_34 = arith.constant 0.000000e+00 : f32
    %74 = vector.broadcast %cst_34 : f32 to vector<1x32xf32>
    %75 = arith.cmpf oeq, %73, %74 : vector<1x32xf32>
    %cst_35 = arith.constant 1.000000e+00 : f32
    %76 = vector.broadcast %cst_35 : f32 to vector<1x32xf32>
    %77 = arith.select %75, %76, %73 : vector<1x32xi1>, vector<1x32xf32>
    %78 = tpu.reciprocal %77 {approx = true} : vector<1x32xf32> -> vector<1x32xf32>
    %79 = vector.broadcast %78 : vector<1x32xf32> to vector<16x32xf32>
    %80 = arith.mulf %71, %79 : vector<16x32xf32>
    %cst_36 = arith.constant dense<0.000000e+00> : vector<16x32xf32>
    %81 = tpu.matmul %52, %63, %cst_36 {dimension_numbers = #tpu.dot_dimension_numbers<[1], [0], [0], [1], [0, 0, 1, 1], [], []>} : vector<16x16xf32>, vector<16x32xf32>, vector<16x32xf32> -> vector<16x32xf32>
    %82 = arith.mulf %80, %81 : vector<16x32xf32>
    %83 = arith.addf %43, %82 : vector<16x32xf32>
    %84 = vector.extract_strided_slice %1 {offsets = [5, 0], sizes = [1, 32], strides = [1, 1]} : vector<16x128xf32> to vector<1x32xf32>
    %85 = vector.extract_strided_slice %1 {offsets = [6, 0], sizes = [1, 32], strides = [1, 1]} : vector<16x128xf32> to vector<1x32xf32>
    %cst_37 = arith.constant dense<0.000000e+00> : vector<16xf32>
    %86 = vector.multi_reduction <add>, %83, %cst_37 [1] : vector<16x32xf32> to vector<16xf32>
    %87 = vector.shape_cast %86 : vector<16xf32> to vector<16x1xf32>
    %cst_38 = arith.constant 3.200000e+01 : f32
    %88 = vector.broadcast %cst_38 : f32 to vector<16x1xf32>
    %89 = arith.divf %87, %88 : vector<16x1xf32>
    %90 = vector.broadcast %89 : vector<16x1xf32> to vector<16x32xf32>
    %91 = arith.subf %83, %90 : vector<16x32xf32>
    %92 = arith.mulf %91, %91 : vector<16x32xf32>
    %cst_39 = arith.constant dense<0.000000e+00> : vector<16xf32>
    %93 = vector.multi_reduction <add>, %92, %cst_39 [1] : vector<16x32xf32> to vector<16xf32>
    %94 = vector.shape_cast %93 : vector<16xf32> to vector<16x1xf32>
    %cst_40 = arith.constant 3.200000e+01 : f32
    %95 = vector.broadcast %cst_40 : f32 to vector<16x1xf32>
    %96 = arith.divf %94, %95 : vector<16x1xf32>
    %97 = vector.broadcast %89 : vector<16x1xf32> to vector<16x32xf32>
    %98 = arith.subf %83, %97 : vector<16x32xf32>
    %cst_41 = arith.constant 9.99999974E-6 : f32
    %99 = vector.broadcast %cst_41 : f32 to vector<16x1xf32>
    %100 = arith.addf %96, %99 : vector<16x1xf32>
    %101 = math.rsqrt %100 : vector<16x1xf32>
    %102 = vector.broadcast %101 : vector<16x1xf32> to vector<16x32xf32>
    %103 = arith.mulf %98, %102 : vector<16x32xf32>
    %104 = vector.broadcast %84 : vector<1x32xf32> to vector<16x32xf32>
    %105 = arith.mulf %103, %104 : vector<16x32xf32>
    %106 = vector.broadcast %85 : vector<1x32xf32> to vector<16x32xf32>
    %107 = arith.addf %105, %106 : vector<16x32xf32>
    %c96 = arith.constant 96 : index
    %c0_42 = arith.constant 0 : index
    %108 = vector.load %arg2[%c96, %c0_42] : memref<528x128xbf16, #tpu.memory_space<vmem>>, vector<32x128xbf16>
    %109 = arith.extf %108 : vector<32x128xbf16> to vector<32x128xf32>
    %cst_43 = arith.constant dense<0.000000e+00> : vector<16x128xf32>
    %110 = tpu.matmul %107, %109, %cst_43 {dimension_numbers = #tpu.dot_dimension_numbers<[1], [0], [0], [1], [0, 0, 1, 1], [], []>} : vector<16x32xf32>, vector<32x128xf32>, vector<16x128xf32> -> vector<16x128xf32>
    %111 = vector.extract_strided_slice %1 {offsets = [3, 0], sizes = [1, 128], strides = [1, 1]} : vector<16x128xf32> to vector<1x128xf32>
    %112 = vector.broadcast %111 : vector<1x128xf32> to vector<16x128xf32>
    %113 = arith.addf %110, %112 : vector<16x128xf32>
    %cst_44 = arith.constant 0.000000e+00 : f32
    %114 = vector.broadcast %cst_44 : f32 to vector<16x128xf32>
    %115 = arith.maximumf %113, %114 : vector<16x128xf32>
    %c128 = arith.constant 128 : index
    %c0_45 = arith.constant 0 : index
    %116 = vector.load %arg2[%c128, %c0_45] : memref<528x128xbf16, #tpu.memory_space<vmem>>, vector<128x32xbf16>
    %117 = arith.extf %116 : vector<128x32xbf16> to vector<128x32xf32>
    %cst_46 = arith.constant dense<0.000000e+00> : vector<16x32xf32>
    %118 = tpu.matmul %115, %117, %cst_46 {dimension_numbers = #tpu.dot_dimension_numbers<[1], [0], [0], [1], [0, 0, 1, 1], [], []>} : vector<16x128xf32>, vector<128x32xf32>, vector<16x32xf32> -> vector<16x32xf32>
    %119 = vector.extract_strided_slice %1 {offsets = [4, 0], sizes = [1, 32], strides = [1, 1]} : vector<16x128xf32> to vector<1x32xf32>
    %120 = vector.broadcast %119 : vector<1x32xf32> to vector<16x32xf32>
    %121 = arith.addf %118, %120 : vector<16x32xf32>
    %122 = arith.addf %107, %121 : vector<16x32xf32>
    %123 = vector.extract_strided_slice %1 {offsets = [7, 0], sizes = [1, 32], strides = [1, 1]} : vector<16x128xf32> to vector<1x32xf32>
    %124 = vector.extract_strided_slice %1 {offsets = [8, 0], sizes = [1, 32], strides = [1, 1]} : vector<16x128xf32> to vector<1x32xf32>
    %cst_47 = arith.constant dense<0.000000e+00> : vector<16xf32>
    %125 = vector.multi_reduction <add>, %122, %cst_47 [1] : vector<16x32xf32> to vector<16xf32>
    %126 = vector.shape_cast %125 : vector<16xf32> to vector<16x1xf32>
    %cst_48 = arith.constant 3.200000e+01 : f32
    %127 = vector.broadcast %cst_48 : f32 to vector<16x1xf32>
    %128 = arith.divf %126, %127 : vector<16x1xf32>
    %129 = vector.broadcast %128 : vector<16x1xf32> to vector<16x32xf32>
    %130 = arith.subf %122, %129 : vector<16x32xf32>
    %131 = arith.mulf %130, %130 : vector<16x32xf32>
    %cst_49 = arith.constant dense<0.000000e+00> : vector<16xf32>
    %132 = vector.multi_reduction <add>, %131, %cst_49 [1] : vector<16x32xf32> to vector<16xf32>
    %133 = vector.shape_cast %132 : vector<16xf32> to vector<16x1xf32>
    %cst_50 = arith.constant 3.200000e+01 : f32
    %134 = vector.broadcast %cst_50 : f32 to vector<16x1xf32>
    %135 = arith.divf %133, %134 : vector<16x1xf32>
    %136 = vector.broadcast %128 : vector<16x1xf32> to vector<16x32xf32>
    %137 = arith.subf %122, %136 : vector<16x32xf32>
    %cst_51 = arith.constant 9.99999974E-6 : f32
    %138 = vector.broadcast %cst_51 : f32 to vector<16x1xf32>
    %139 = arith.addf %135, %138 : vector<16x1xf32>
    %140 = math.rsqrt %139 : vector<16x1xf32>
    %141 = vector.broadcast %140 : vector<16x1xf32> to vector<16x32xf32>
    %142 = arith.mulf %137, %141 : vector<16x32xf32>
    %143 = vector.broadcast %123 : vector<1x32xf32> to vector<16x32xf32>
    %144 = arith.mulf %142, %143 : vector<16x32xf32>
    %145 = vector.broadcast %124 : vector<1x32xf32> to vector<16x32xf32>
    %146 = arith.addf %144, %145 : vector<16x32xf32>
    %c256 = arith.constant 256 : index
    %c0_52 = arith.constant 0 : index
    %147 = vector.load %arg2[%c256, %c0_52] : memref<528x128xbf16, #tpu.memory_space<vmem>>, vector<32x16xbf16>
    %148 = arith.extf %147 : vector<32x16xbf16> to vector<32x16xf32>
    %cst_53 = arith.constant dense<0.000000e+00> : vector<16x16xf32>
    %149 = tpu.matmul %146, %148, %cst_53 {dimension_numbers = #tpu.dot_dimension_numbers<[1], [0], [0], [1], [0, 0, 1, 1], [], []>} : vector<16x32xf32>, vector<32x16xf32>, vector<16x16xf32> -> vector<16x16xf32>
    %150 = vector.extract_strided_slice %1 {offsets = [9, 0], sizes = [1, 16], strides = [1, 1]} : vector<16x128xf32> to vector<1x16xf32>
    %151 = vector.broadcast %150 : vector<1x16xf32> to vector<16x16xf32>
    %152 = arith.addf %149, %151 : vector<16x16xf32>
    %cst_54 = arith.constant 0.000000e+00 : f32
    %153 = vector.broadcast %cst_54 : f32 to vector<16x16xf32>
    %154 = arith.maximumf %152, %153 : vector<16x16xf32>
    %c288 = arith.constant 288 : index
    %c0_55 = arith.constant 0 : index
    %155 = vector.load %arg2[%c288, %c0_55] : memref<528x128xbf16, #tpu.memory_space<vmem>>, vector<16x128xbf16>
    %156 = arith.extf %155 : vector<16x128xbf16> to vector<16x128xf32>
    %cst_56 = arith.constant dense<0.000000e+00> : vector<16x128xf32>
    %157 = tpu.matmul %154, %156, %cst_56 {dimension_numbers = #tpu.dot_dimension_numbers<[1], [0], [0], [1], [0, 0, 1, 1], [], []>} : vector<16x16xf32>, vector<16x128xf32>, vector<16x128xf32> -> vector<16x128xf32>
    %158 = vector.extract_strided_slice %1 {offsets = [10, 0], sizes = [1, 128], strides = [1, 1]} : vector<16x128xf32> to vector<1x128xf32>
    %159 = vector.broadcast %158 : vector<1x128xf32> to vector<16x128xf32>
    %160 = arith.addf %157, %159 : vector<16x128xf32>
    %c0_57 = arith.constant 0 : index
    %c0_58 = arith.constant 0 : index
    %c0_59 = arith.constant 0 : index
    %161 = vector.load %arg3[%c0_57, %c0_58, %c0_59] : memref<1x32x128xf32, #tpu.memory_space<vmem>>, vector<1x16x128xf32>
    %162 = vector.shape_cast %161 : vector<1x16x128xf32> to vector<16x128xf32>
    %163 = vector.shape_cast %160 : vector<16x128xf32> to vector<1x16x128xf32>
    tpu.vector_store %arg3[%c0_57, %c0_58, %c0_59], %163 {strides = array<i32>} : memref<1x32x128xf32, #tpu.memory_space<vmem>>, vector<1x16x128xf32>,
    %c496 = arith.constant 496 : index
    %c0_60 = arith.constant 0 : index
    %164 = vector.load %arg2[%c496, %c0_60] : memref<528x128xbf16, #tpu.memory_space<vmem>>, vector<32x128xbf16>
    %165 = arith.extf %164 : vector<32x128xbf16> to vector<32x128xf32>
    %cst_61 = arith.constant dense<0.000000e+00> : vector<16x128xf32>
    %166 = tpu.matmul %146, %165, %cst_61 {dimension_numbers = #tpu.dot_dimension_numbers<[1], [0], [0], [1], [0, 0, 1, 1], [], []>} : vector<16x32xf32>, vector<32x128xf32>, vector<16x128xf32> -> vector<16x128xf32>
    %c0_62 = arith.constant 0 : index
    %c16 = arith.constant 16 : index
    %c0_63 = arith.constant 0 : index
    %167 = vector.load %arg3[%c0_62, %c16, %c0_63] : memref<1x32x128xf32, #tpu.memory_space<vmem>>, vector<1x16x128xf32>
    %168 = vector.shape_cast %167 : vector<1x16x128xf32> to vector<16x128xf32>
    %169 = vector.shape_cast %166 : vector<16x128xf32> to vector<1x16x128xf32>
    tpu.vector_store %arg3[%c0_62, %c16, %c0_63], %169 {strides = array<i32>} : memref<1x32x128xf32, #tpu.memory_space<vmem>>, vector<1x16x128xf32>,
    return
  }
  func.func @transform_0(%arg0: i32) -> (i32, i32, i32) {
    %c0_i32 = arith.constant 0 : i32
    %c0_i32_0 = arith.constant 0 : i32
    %c0_i32_1 = arith.constant 0 : i32
    return %arg0, %c0_i32, %c0_i32_0 : i32, i32, i32
  }
  func.func @transform_1(%arg0: i32) -> (i32, i32) {
    %c0_i32 = arith.constant 0 : i32
    %c0_i32_0 = arith.constant 0 : i32
    %c0_i32_1 = arith.constant 0 : i32
    return %c0_i32, %c0_i32_0 : i32, i32
  }
  func.func @transform_2(%arg0: i32) -> (i32, i32, i32) {
    %c0_i32 = arith.constant 0 : i32
    %c0_i32_0 = arith.constant 0 : i32
    %c0_i32_1 = arith.constant 0 : i32
    return %arg0, %c0_i32, %c0_i32_0 : i32, i32, i32
  }
}

</mosaic_0001>

<bundles_post_ra>
// kernel: _forward_batched.1
= control target key start
LH: loop header
LB: loop body
LE: loop exit
PB: predicated region body
PF: predicated region fallthrough
CT: control target
= control target key end

     0   :  { %s1512_s9 = smov 0   ;;  %s1858_s0 = inlined_call_operand.vmem [shape: f32[4,88,128], index: 0, kind: input, shape index: {}]   ;;  %s1859_s1 = inlined_call_operand.vmem [shape: bf16[528,128], index: 1, kind: input, shape index: {}]   ;;  %s1860_s2 = inlined_call_operand.vmem [shape: f32[4,32,128], index: 2, kind: output, shape index: {}]  }
   0x1 LB: > { %s1194_s10 = sadd.s32 4294967295, %s1491_s9   ;;  %p1198_p0 = scmp.ge.s32.totalorder %s1491_s9, 1  ;;  %s1491_s9 = sphi %s1512_s9, %s12_s9  }
   0x2   : > { %p112_p1 = scmp.lt.s32.totalorder %s1491_s9, 5 }
   0x4   : > { %p113_p2 = pnand %p1198_p0, %p112_p1 }
   0x5   : > { %p134_p3 = scmp.lt.s32.totalorder (!%p113_p2), %s1194_s10, 3  ;;  %s1495_s22 = smov (!%p113_p2), 64  }
   0x6   : > { %116 = sbr.rel (%p113_p2) target bundleno = 2213 (0x8a5), region = 28 }
   0xb   : > { %v1407_v0 = vld [vmem:[%s1859_s1 + $0x8] sm:$0xff]   ;;  %v1412_v1 = vld [vmem:[%s1859_s1 + $0xb0] sm:$0xff]   ;;  %v1408_v2 = vld [vmem:[%s1859_s1 + $0x18] sm:$0xff]   ;;  %s1862_s10 = smov (!%p134_p3, %s1194_s10), 3  ;;  %vm249_vm0 = vcmask 130048   ;;  %vm168_vm1 = vcmask 261120  }
   0xc   : > { %v1285_v3 = vunpack.c.h.bf16 %v1407_v0  ;;  %v1305_v4 = vunpack.c.h.bf16 %v1412_v1  ;;  %v1284_v5 = vunpack.c.l.bf16 %v1407_v0  ;;  %v1289_v6 = vunpack.c.h.bf16 %v1408_v2  ;;  %v1279_v7 = vld [vmem:[%s1859_s1] sm:$0xff]   ;;  %v1411_v8 = vld [vmem:[%s1859_s1 + $0xa8] sm:$0xff]   ;;  %s1442_s21 = smul.u32 88, %s1862_s10  ;;  %v1409_v19 = vld [vmem:[%s1859_s1 + $0x98] sm:$0xff]   ;;  %s1273_s3 = sshll.u32 %s1862_s10, 5 }
   0xd   : > { %v1304_v9 = vunpack.c.l.bf16 %v1412_v1  ;;  %v1288_v10 = vunpack.c.l.bf16 %v1408_v2  ;;  %v1281_v11 = vunpack.c.h.bf16 %v1279_v7  ;;  %v1301_v12 = vunpack.c.h.bf16 %v1411_v8  ;;  %v1410_v13 = vld [vmem:[%s1859_s1 + $0xa0] sm:$0xff]   ;;  %v1572_v27 = vld [vmem:[%s1859_s1 + $0xb8] sm:$0xff]   ;;  %v1606_v37 = vld [vmem:[%s1859_s1 + $0xc8] sm:$0xff]   ;;  %s143_s6 = scalar_lea.vmem %s1860_s2, %s1273_s3 }
   0xe   : > { %205 = vmatpush.msra.mxu0 %v1285_v3  ;;  %314 = vmatpush.msra.mxu2 %v1305_v4  ;;  %v1280_v14 = vunpack.c.l.bf16 %v1279_v7  ;;  %v1300_v15 = vunpack.c.l.bf16 %v1411_v8  ;;  %s1544_s26 = scalar_lea.vmem %s1858_s0, %s1442_s21  ;;  %v1297_v18 = vunpack.c.h.bf16 %v1410_v13  ;;  %v1296_v20 = vunpack.c.l.bf16 %v1410_v13  ;;  %v1589_v32 = vld [vmem:[%s1859_s1 + $0xc0] sm:$0xff]   ;;  %v1621_v41 = vld [vmem:[%s1859_s1 + $0xd0] sm:$0xff]   ;;  %s1494_s21 = smov 96  }
   0xf   : > { %267 = vmatpush.msra.mxu1 %v1289_v6  ;;  %v158_v16 = vld [vmem:[%s1544_s26 + $0x50] sm:$0x1]  ;;  %v148_v17 = vld [vmem:[%s1544_s26] sm:$0xff]  ;;  %v1293_v21 = vunpack.c.h.bf16 %v1409_v19  ;;  %v1292_v22 = vunpack.c.l.bf16 %v1409_v19  ;;  %v149_v23 = vld [vmem:[%s1544_s26 + $0x8] sm:$0xff]  ;;  %vm299_vm2 = vcmask 523264   ;;  %v1308_v28 = vunpack.c.l.bf16 %v1572_v27 }
  0x10   : > { %206 = vmatpush.msra.mxu0 %v1284_v5  ;;  %315 = vmatpush.msra.mxu2 %v1304_v9  ;;  %v1555_v24 = vld [vmem:[%s1544_s26 + $0x40] sm:$0xff]  ;;  %v1561_v25 = vld [vmem:[%s1544_s26 + $0x48] sm:$0xff]  ;;  %v150_v26 = vld [vmem:[%s1544_s26 + $0x10] sm:$0xff]  ;;  %v1309_v30 = vunpack.c.h.bf16 %v1572_v27  ;;  %v1312_v33 = vunpack.c.l.bf16 %v1589_v32  ;;  %v1313_v35 = vunpack.c.h.bf16 %v1589_v32  ;;  %v1316_v38 = vunpack.c.l.bf16 %v1606_v37 }
  0x11   : > { %268 = vmatpush.msra.mxu1 %v1288_v10  ;;  %v151_v29 = vld [vmem:[%s1544_s26 + $0x18] sm:$0xff]  ;;  %v152_v31 = vld [vmem:[%s1544_s26 + $0x20] sm:$0xff]  ;;  %v153_v34 = vld [vmem:[%s1544_s26 + $0x28] sm:$0xff]  ;;  %v1317_v40 = vunpack.c.h.bf16 %v1606_v37  ;;  %v1320_v42 = vunpack.c.l.bf16 %v1621_v41  ;;  %v1321_v43 = vunpack.c.h.bf16 %v1621_v41  ;;  %v1493_v49 = vmov 0.0  }
  0x12   : > { %207 = vmatpush.msra.mxu0 %v1281_v11  ;;  %316 = vmatpush.msra.mxu2 %v1301_v12  ;;  %v154_v36 = vld [vmem:[%s1544_s26 + $0x30] sm:$0xff]  ;;  %v155_v39 = vld [vmem:[%s1544_s26 + $0x38] sm:$0xff] }
  0x13   : > { %1210 = vmatmul.msk.f32.vlgmr.msra.gmra.mxu1 %vm249_vm0, %v158_v16  ;;  %v1654_v58 = vld [vmem:[%s1859_s1 + $0x10] sm:$0xff]  }
  0x14   : > { %208 = vmatpush.msra.mxu0 %v1280_v14  ;;  %317 = vmatpush.msra.mxu2 %v1300_v15  ;;  %v1657_v60 = vunpack.c.l.bf16 %v1654_v58 }
  0x15   : > { %1202 = vmatmul.msk.f32.vlgmr.msra.gmra.mxu0 %vm168_vm1, %v148_v17 }
  0x16   : > { %318 = vmatpush.msra.mxu2 %v1297_v18  ;;  %v247_v62 = vrot.slane %v1657_v60, 1  ;;  %v167_v2 = vperm.slane %v1657_v60, 0 }
  0x18   : > { %319 = vmatpush.msra.mxu2 %v1296_v20 }
  0x1a   : > { %320 = vmatpush.msra.mxu2 %v1293_v21 }
  0x1c   : > { %321 = vmatpush.msra.mxu2 %v1292_v22 }
  0x1d   : > { %1203 = vmatmul.msk.f32.gmra.mxu0 %vm168_vm1, %v149_v23  ;;  %1211 = vmatmul.msk.f32.vlgmr.msra.gmra.mxu2 %vm299_vm2, %v1555_v24 }
  0x1e   : > { %485 = vmatpush.msrb.mxu2 %v1561_v25 }
  0x20   : > { %486 = vmatpush.msrb.mxu2 %v1555_v24 }
  0x25   : > { %1204 = vmatmul.msk.f32.gmra.mxu0 %vm168_vm1, %v150_v26  ;;  %1212 = vmatmul.msk.f32.gmra.mxu2 %vm299_vm2, %v1561_v25 }
  0x2d   : > { %1205 = vmatmul.msk.f32.gmra.mxu0 %vm168_vm1, %v151_v29  ;;  %1219 = vmatmul.msk.f32.vlgmr.msrb.gmra.mxu2 %vm249_vm0, %v1308_v28 }
  0x35   : > { %1206 = vmatmul.msk.f32.gmra.mxu0 %vm168_vm1, %v152_v31  ;;  %1220 = vmatmul.msk.f32.gmra.mxu2 %vm249_vm0, %v1309_v30 }
  0x3d   : > { %1207 = vmatmul.msk.f32.gmra.mxu0 %vm168_vm1, %v153_v34  ;;  %1221 = vmatmul.msk.f32.gmra.mxu2 %vm249_vm0, %v1312_v33 }
  0x45   : > { %1208 = vmatmul.msk.f32.gmra.mxu0 %vm168_vm1, %v154_v36  ;;  %1222 = vmatmul.msk.f32.gmra.mxu2 %vm249_vm0, %v1313_v35 }
  0x4d   : > { %1209 = vmatmul.msk.f32.gmra.mxu0 %vm168_vm1, %v155_v39  ;;  %1223 = vmatmul.msk.f32.gmra.mxu2 %vm249_vm0, %v1316_v38 }
  0x55   : > { %1224 = vmatmul.msk.f32.gmra.mxu2 %vm249_vm0, %v1317_v40 }
  0x5d   : > { %1225 = vmatmul.msk.f32.gmra.mxu2 %vm249_vm0, %v1320_v42 }
  0x65   : > { %1226 = vmatmul.msk.f32.gmra.mxu2 %vm249_vm0, %v1321_v43 }
  0x90   : > { %v270_v63 = vpop.f32.mrf.mxu1 }
  0x91   : > { %v271_v1 = vadd.f32 %v270_v63, %v247_v62 }
  0x92   : > { %v210_v44 = vpop.f32.mrf.mxu0 }
  0x93   : > { %v273_v4 = vmax.f32 %v271_v1, 0.0  ;;  %v211_v23 = vadd.f32 %v210_v44, %v167_v2 }
  0x95   : > { %v274_v9 = vperm.slane %v273_v4, 0  ;;  %v234_v39 = vmax.f32 %v211_v23, 0.0 }
  0x9a   : > { %v213_v45 = vpop.f32.mrf.mxu0 }
  0x9b   : > { %v214_v20 = vadd.f32 %v213_v45, %v167_v2 }
  0x9d   : > { %v235_v31 = vmax.f32 %v214_v20, 0.0 }
  0x9f   : > { %v276_v45 = vadd.f32 %v274_v9, %v235_v31  ;;  %v1422_v31 = vld [vmem:[%s1859_s1 + $0xf0] sm:$0xff]  }
  0xa0   : > { %v1631_v46 = vpop.f32.mrf.mxu2 }
  0xa1   : > { %vm329_vm3 = vcmp.ne.f32.partialorder %v1631_v46, 0.0 }
  0xa2   : > { %v216_v47 = vpop.f32.mrf.mxu0  ;;  %v1637_v50 = vsel %vm329_vm3, 1.0, %v1493_v49 }
  0xa3   : > { %v335_v52 = vsel %vm299_vm2, %v1637_v50, 0.0  ;;  %v217_v17 = vadd.f32 %v216_v47, %v167_v2  ;;  %v366_v44 = vsub.f32 %v1631_v46, %v1637_v50 }
  0xa4   : > { %336 = vadd.xlane.f32.xlu0 %v335_v52 }
  0xa5   : > { %v236_v26 = vmax.f32 %v217_v17, 0.0 }
  0xa7   : > { %v277_v47 = vadd.f32 %v274_v9, %v236_v26 }
  0xa8   : > { %v1634_v48 = vpop.f32.mrf.mxu2 }
  0xa9   : > { %vm330_vm4 = vcmp.ne.f32.partialorder %v1634_v48, 0.0 }
  0xaa   : > { %v219_v51 = vpop.f32.mrf.mxu0  ;;  %v1645_v54 = vsel %vm330_vm4, 1.0, %v1493_v49 }
  0xab   : > { %v338_v56 = vsel %vm299_vm2, %v1645_v54, 0.0  ;;  %v220_v13 = vadd.f32 %v219_v51, %v167_v2  ;;  %v275_v51 = vadd.f32 %v274_v9, %v234_v39  ;;  %v1344_v39 = vunpack.c.l.bf16 %v1422_v31 }
  0xac   : > { %339 = vadd.xlane.f32.xlu0 %v338_v56 }
  0xad   : > { %v237_v21 = vmax.f32 %v220_v13, 0.0 }
  0xaf   : > { %v278_v34 = vadd.f32 %v274_v9, %v237_v21 }
  0xb0   : > { %v1642_v53 = vpop.f32.mrf.mxu2 }
  0xb2   : > { %v222_v55 = vpop.f32.mrf.mxu0 }
  0xb3   : > { %v223_v10 = vadd.f32 %v222_v55, %v167_v2  ;;  %v367_v55 = vsub.f32 %v1634_v48, %v1645_v54 }
  0xb5   : > { %v238_v18 = vmax.f32 %v223_v10, 0.0 }
  0xb7   : > { %v279_v29 = vadd.f32 %v274_v9, %v238_v18 }
  0xb8   : > { %v1649_v57 = vpop.f32.mrf.mxu2 }
  0xba   : > { %v225_v59 = vpop.f32.mrf.mxu0 }
  0xbb   : > { %v226_v7 = vadd.f32 %v225_v59, %v167_v2 }
  0xbd   : > { %v239_v14 = vmax.f32 %v226_v7, 0.0 }
  0xbf   : > { %v280_v22 = vadd.f32 %v274_v9, %v239_v14 }
  0xc0   : > { %v1659_v61 = vpop.f32.mrf.mxu2 }
  0xc2   : > { %v228_v0 = vpop.f32.mrf.mxu0 }
  0xc3   : > { %v229_v5 = vadd.f32 %v228_v0, %v167_v2 }
  0xc5   : > { %v240_v11 = vmax.f32 %v229_v5, 0.0 }
  0xc7   : > { %v281_v19 = vadd.f32 %v274_v9, %v240_v11 }
  0xc8   : > { %v497_v3 = vpop.f32.mrf.mxu2 }
  0xca   : > { %v231_v6 = vpop.f32.mrf.mxu0 }
  0xcb   : > { %v232_v8 = vadd.f32 %v231_v6, %v167_v2 }
  0xcd   : > { %v241_v12 = vmax.f32 %v232_v8, 0.0 }
  0xcf   : > { %v282_v15 = vadd.f32 %v274_v9, %v241_v12 }
  0xd0   : > { %v500_v16 = vpop.f32.mrf.mxu2 }
  0xd1   : > { %351 = vmatpush.msra.mxu3 %v282_v15  ;;  %382 = vmatpush.msrb.mxu1 %v282_v15 }
  0xd3   : > { %352 = vmatpush.msra.mxu3 %v281_v19  ;;  %383 = vmatpush.msrb.mxu1 %v281_v19 }
  0xd5   : > { %353 = vmatpush.msra.mxu3 %v280_v22  ;;  %384 = vmatpush.msrb.mxu1 %v280_v22 }
  0xd7   : > { %354 = vmatpush.msra.mxu3 %v279_v29  ;;  %385 = vmatpush.msrb.mxu1 %v279_v29 }
  0xd8   : > { %v503_v36 = vpop.f32.mrf.mxu2 }
  0xd9   : > { %355 = vmatpush.msra.mxu3 %v278_v34  ;;  %386 = vmatpush.msrb.mxu1 %v278_v34  ;;  %v1421_v34 = vld [vmem:[%s1859_s1 + $0xe8] sm:$0xff]  }
  0xdb   : > { %356 = vmatpush.msra.mxu3 %v277_v47  ;;  %387 = vmatpush.msrb.mxu1 %v277_v47  ;;  %v1341_v47 = vunpack.c.h.bf16 %v1421_v34 }
  0xdd   : > { %357 = vmatpush.msra.mxu3 %v276_v45  ;;  %388 = vmatpush.msrb.mxu1 %v276_v45 }
  0xdf   : > { %358 = vmatpush.msra.mxu3 %v275_v51  ;;  %389 = vmatpush.msrb.mxu1 %v275_v51  ;;  %v579_v51 = vperm.slane %v1657_v60, 2 }
  0xe0   : > { %1215 = vmatmul.msk.f32.vlgmr.msra.gmra.mxu3 %vm299_vm2, %v1555_v24  ;;  %1217 = vmatmul.msk.f32.vlgmr.msrb.gmra.mxu1 %vm299_vm2, %v366_v44  ;;  %v506_v52 = vpop.f32.mrf.mxu2 }
  0xe8   : > { %1216 = vmatmul.msk.f32.gmra.mxu3 %vm299_vm2, %v1561_v25  ;;  %1218 = vmatmul.msk.f32.gmra.mxu1 %vm299_vm2, %v367_v55  ;;  %v509_v56 = vpop.f32.mrf.mxu2  ;;  %v1418_v25 = vld [vmem:[%s1859_s1 + $0x28] sm:$0xff]  }
  0xe9   : > { %1227 = vmatpush.xpose.msk.msrb.mxu3 %vm299_vm2, %v509_v56  ;;  %v1329_v46 = vunpack.c.h.bf16 %v1418_v25  ;;  %v1328_v48 = vunpack.c.l.bf16 %v1418_v25  ;;  %v1420_v25 = vld [vmem:[%s1859_s1 + $0xe0] sm:$0xff]  }
  0xeb   : > { %598 = vmatpush.msra.mxu1 %v1329_v46  ;;  %v1337_v46 = vunpack.c.h.bf16 %v1420_v25 }
  0xed   : > { %1228 = vmatpush.xpose.msk.msrb.mxu3 %vm299_vm2, %v506_v52  ;;  %599 = vmatpush.msra.mxu1 %v1328_v48  ;;  %v1336_v48 = vunpack.c.l.bf16 %v1420_v25 }
  0xf1   : > { %1229 = vmatpush.xpose.msk.msrb.mxu3 %vm299_vm2, %v503_v36  ;;  %v1345_v36 = vunpack.c.h.bf16 %v1422_v31 }
  0xf5   : > { %1230 = vmatpush.xpose.msk.msrb.mxu3 %vm299_vm2, %v500_v16 }
  0xf9   : > { %1231 = vmatpush.xpose.msk.msrb.mxu3 %vm299_vm2, %v497_v3 }
  0xfd   : > { %1232 = vmatpush.xpose.msk.msrb.mxu3 %vm299_vm2, %v1659_v61 }
 0x101   : > { %1233 = vmatpush.xpose.msk.msrb.mxu3 %vm299_vm2, %v1649_v57  ;;  %v1417_v57 = vld [vmem:[%s1859_s1 + $0x20] sm:$0xff]  }
 0x105   : > { %1234 = vmatpush.xpose.msk.msrb.mxu3 %vm299_vm2, %v1642_v53  ;;  %v1325_v53 = vunpack.c.h.bf16 %v1417_v57 }
 0x107   : > { %600 = vmatpush.msra.mxu1 %v1325_v53 }
 0x108   : > { %1235 = vmatmul.msk.f32.vlgmr.msrb.gmra.mxu3 %vm299_vm2, %v1637_v50  ;;  %v1324_v50 = vunpack.c.l.bf16 %v1417_v57  ;;  %v1419_v57 = vld [vmem:[%s1859_s1 + $0xd8] sm:$0xff]  }
 0x109   : > { %757 = vmatpush.msra.mxu3 %v1345_v36  ;;  %v1332_v53 = vunpack.c.l.bf16 %v1419_v57 }
 0x10a   : > { %601 = vmatpush.msra.mxu1 %v1324_v50 }
 0x10b   : > { %758 = vmatpush.msra.mxu3 %v1344_v39 }
 0x10d   : > { %759 = vmatpush.msra.mxu3 %v1341_v47 }
 0x110   : > { %1236 = vmatmul.msk.f32.gmra.mxu3 %vm299_vm2, %v1645_v54 }
 0x117   : > { %v337_v24 = vpop.xlane.xlu0 %336 }
 0x118   : > { %v341_v59 = vmax.f32 %v337_v24, 1.0  ;;  %v1340_v24 = vunpack.c.l.bf16 %v1421_v34 }
 0x11a   : > { %1465 = vrcp.f32 %v341_v59  ;;  %vm402_vm5 = vweird.f32 %v341_v59  ;;  %v408_v4 = vand.u32 2147483648, %v341_v59  ;;  %v406_v6 = vand.u32 2147483647, %v341_v59  ;;  %760 = vmatpush.msra.mxu3 %v1340_v24 }
 0x11c   : > { %v409_v9 = vor.u32 1.1754944e-38, %v408_v4  ;;  %vm407_vm8 = vcmp.eq.f32.partialorder %v406_v6, 8.507059e+37  ;;  %761 = vmatpush.msra.mxu3 %v1337_v46 }
 0x11e   : > { %762 = vmatpush.msra.mxu3 %v1336_v48 }
 0x11f   : > { %v340_v54 = vpop.xlane.xlu0 %339 }
 0x120   : > { %v342_v61 = vmax.f32 %v340_v54, 1.0  ;;  %v1466_v62 = vpop.eup %1465 }
 0x121   : > { %v398_v63 = vmul.f32 %v1466_v62, %v341_v59  ;;  %vm403_vm6 = vweird.f32 %v1466_v62  ;;  %v1333_v59 = vunpack.c.h.bf16 %v1419_v57 }
 0x122   : > { %1467 = vrcp.f32 %v342_v61  ;;  %vm404_vm7 = vmor %vm402_vm5, %vm403_vm6  ;;  %vm417_vm9 = vweird.f32 %v342_v61  ;;  %v423_v13 = vand.u32 2147483648, %v342_v61  ;;  %v421_v16 = vand.u32 2147483647, %v342_v61 }
 0x123   : > { %v399_v0 = vsub.f32 1.0, %v398_v63  ;;  %763 = vmatpush.msra.mxu3 %v1333_v59 }
 0x124   : > { %v424_v19 = vor.u32 1.1754944e-38, %v423_v13  ;;  %vm422_vm12 = vcmp.eq.f32.partialorder %v421_v16, 8.507059e+37 }
 0x125   : > { %v400_v2 = vmul.f32 %v1466_v62, %v399_v0  ;;  %764 = vmatpush.msra.mxu3 %v1332_v53 }
 0x127   : > { %v401_v5 = vadd.f32 %v1466_v62, %v400_v2 }
 0x128   : > { %v1468_v1 = vpop.eup %1467 }
 0x129   : > { %v413_v3 = vmul.f32 %v1468_v1, %v342_v61  ;;  %v405_v10 = vsel %vm404_vm7, %v1466_v62, %v401_v5  ;;  %vm418_vm10 = vweird.f32 %v1468_v1 }
 0x12a   : > { %v410_v12 = vsel %vm407_vm8, %v409_v9, %v405_v10  ;;  %vm419_vm11 = vmor %vm417_vm9, %vm418_vm10 }
 0x12b   : > { %v414_v7 = vsub.f32 1.0, %v413_v3 }
 0x12d   : > { %v415_v11 = vmul.f32 %v1468_v1, %v414_v7 }
 0x12f   : > { %v416_v15 = vadd.f32 %v1468_v1, %v415_v11 }
 0x131   : > { %v420_v20 = vsel %vm419_vm11, %v1468_v1, %v416_v15 }
 0x132   : > { %v425_v22 = vsel %vm422_vm12, %v424_v19, %v420_v20 }
 0x15d   : > { %v391_v8 = vpop.f32.mrf.mxu1 }
 0x15e   : > { %v427_v14 = vmul.f32 %v410_v12, %v391_v8 }
 0x163   : > { %v360_v17 = vpop.f32.mrf.mxu3 }
 0x164   : > { %v1694_v18 = vadd.f32 %v427_v14, %v360_v17 }
 0x165   : > { %v394_v21 = vpop.f32.mrf.mxu1 }
 0x166   : > { %1239 = vmatmul.msk.f32.vlgmr.msra.gmra.mxu1 %vm168_vm1, %v1694_v18  ;;  %v428_v23 = vmul.f32 %v425_v22, %v394_v21 }
 0x16b   : > { %v363_v26 = vpop.f32.mrf.mxu3 }
 0x16c   : > { %v1698_v29 = vadd.f32 %v428_v23, %v363_v26 }
 0x16e   : > { %1240 = vmatmul.msk.f32.gmra.mxu1 %vm168_vm1, %v1698_v29 }
 0x18b   : > { %v559_v8 = vpop.f32.mrf.mxu3 }
 0x18c   : > { %vm565_vm13 = vcmp.gt.f32.partialorder %v559_v8, 0.5 }
 0x18d   : > { %v1237_v12 = vsel %vm565_vm13, 1.0, %v1493_v49 }
 0x193   : > { %v562_v15 = vpop.f32.mrf.mxu3 }
 0x194   : > { %vm566_vm14 = vcmp.gt.f32.partialorder %v562_v15, 0.5 }
 0x195   : > { %v1238_v17 = vsel %vm566_vm14, 1.0, %v1493_v49 }
 0x1e3   : > { %v603_v45 = vpop.f32.mrf.mxu1 }
 0x1e4   : > { %v604_v52 = vadd.f32 %v603_v45, %v579_v51 }
 0x1e6   : > { %v609_v5 = vmul.f32 0.35355338, %v604_v52 }
 0x1eb   : > { %v606_v44 = vpop.f32.mrf.mxu1 }
 0x1ec   : > { %v607_v55 = vadd.f32 %v606_v44, %v579_v51 }
 0x1ee   : > { %v1455_v56 = vpack.i.bf16 %v604_v52, %v607_v55  ;;  %v610_v6 = vmul.f32 0.35355338, %v607_v55 }
 0x1f0   : > { %1456 = vrot.lane.b32.xlu1 %v1455_v56, %s1494_s21 }
 0x1f8   : > { %1461 = vrot.lane.b32.xlu1 %v1455_v56, %s1495_s22 }
 0x262   : > { %v1457_v50 = vpop.permute.xlu1 %1456 }
 0x263   : > { %v1458_v54 = vunpack.i.l.bf16 %v1457_v50  ;;  %v1459_v61 = vunpack.i.h.bf16 %v1457_v50 }
 0x265   : > { %649 = vmatpush.msrb.mxu1 %v1458_v54 }
 0x267   : > { %650 = vmatpush.msrb.mxu1 %v1459_v61 }
 0x268   : > { %1241 = vmatmul.msk.f32.vlgmr.msrb.gmra.mxu1 %vm249_vm0, %v1308_v28 }
 0x26a   : > { %v1462_v62 = vpop.permute.xlu1 %1461 }
 0x26b   : > { %v1463_v63 = vunpack.i.l.bf16 %v1462_v62  ;;  %v1464_v0 = vunpack.i.h.bf16 %v1462_v62 }
 0x26d   : > { %812 = vmatpush.msrb.mxu3 %v1463_v63 }
 0x26f   : > { %813 = vmatpush.msrb.mxu3 %v1464_v0 }
 0x270   : > { %1242 = vmatmul.msk.f32.gmra.mxu1 %vm249_vm0, %v1309_v30 }
 0x278   : > { %1243 = vmatmul.msk.f32.gmra.mxu1 %vm249_vm0, %v1312_v33 }
 0x280   : > { %1244 = vmatmul.msk.f32.gmra.mxu1 %vm249_vm0, %v1313_v35 }
 0x288   : > { %1245 = vmatmul.msk.f32.gmra.mxu1 %vm249_vm0, %v1316_v38 }
 0x290   : > { %1246 = vmatmul.msk.f32.gmra.mxu1 %vm249_vm0, %v1317_v40 }
 0x298   : > { %1247 = vmatmul.msk.f32.gmra.mxu1 %vm249_vm0, %v1320_v42 }
 0x2a0   : > { %1248 = vmatmul.msk.f32.gmra.mxu1 %vm249_vm0, %v1321_v43 }
 0x2e5   : > { %v652_v27 = vpop.f32.mrf.mxu1 }
 0x2e6   : > { %v676_v4 = vmul.f32 %v1332_v53, %v652_v27  ;;  %v1496_v53 = vmov 32.0  }
 0x2ed   : > { %v655_v28 = vpop.f32.mrf.mxu1 }
 0x2ee   : > { %v677_v3 = vmul.f32 %v1333_v59, %v655_v28 }
 0x2f5   : > { %v658_v30 = vpop.f32.mrf.mxu1 }
 0x2f6   : > { %v678_v43 = vmul.f32 %v1336_v48, %v658_v30 }
 0x2fd   : > { %v661_v32 = vpop.f32.mrf.mxu1 }
 0x2fe   : > { %v679_v42 = vmul.f32 %v1337_v46, %v661_v32 }
 0x305   : > { %v664_v33 = vpop.f32.mrf.mxu1 }
 0x306   : > { %v680_v41 = vmul.f32 %v1340_v24, %v664_v33 }
 0x30d   : > { %v667_v35 = vpop.f32.mrf.mxu1 }
 0x30e   : > { %v681_v40 = vmul.f32 %v1341_v47, %v667_v35 }
 0x315   : > { %v670_v1 = vpop.f32.mrf.mxu1 }
 0x316   : > { %v682_v37 = vmul.f32 %v1344_v39, %v670_v1 }
 0x31d   : > { %v673_v38 = vpop.f32.mrf.mxu1 }
 0x31e   : > { %v683_v2 = vmul.f32 %v1345_v36, %v673_v38 }
 0x320   : > { %1249 = vmatpush.xpose.msk.msrb.mxu0 %vm168_vm1, %v683_v2  ;;  %v1424_v2 = vld [vmem:[%s1859_s1 + $0x38] sm:$0xff]  }
 0x324   : > { %1250 = vmatpush.xpose.msk.msrb.mxu0 %vm168_vm1, %v682_v37  ;;  %v1353_v37 = vunpack.c.h.bf16 %v1424_v2 }
 0x328   : > { %1251 = vmatpush.xpose.msk.msrb.mxu0 %vm168_vm1, %v681_v40  ;;  %v1352_v40 = vunpack.c.l.bf16 %v1424_v2 }
 0x32c   : > { %1252 = vmatpush.xpose.msk.msrb.mxu0 %vm168_vm1, %v680_v41  ;;  %v1423_v41 = vld [vmem:[%s1859_s1 + $0x30] sm:$0xff]  }
 0x330   : > { %1253 = vmatpush.xpose.msk.msrb.mxu0 %vm168_vm1, %v679_v42  ;;  %v1349_v42 = vunpack.c.h.bf16 %v1423_v41 }
 0x334   : > { %1254 = vmatpush.xpose.msk.msrb.mxu0 %vm168_vm1, %v678_v43  ;;  %v1348_v43 = vunpack.c.l.bf16 %v1423_v41 }
 0x338   : > { %1255 = vmatpush.xpose.msk.msrb.mxu0 %vm168_vm1, %v677_v3 }
 0x33c   : > { %1256 = vmatpush.xpose.msk.msrb.mxu0 %vm168_vm1, %v676_v4 }
 0x33f   : > { %1257 = vmatmul.msk.f32.vlgmr.msrb.gmra.mxu0 %vm168_vm1, %v609_v5 }
 0x340   : > { %909 = vmatpush.msra.mxu0 %v1353_v37 }
 0x342   : > { %910 = vmatpush.msra.mxu0 %v1352_v40 }
 0x344   : > { %911 = vmatpush.msra.mxu0 %v1349_v42  ;;  %v954_v42 = vperm.slane %v1657_v60, 4 }
 0x346   : > { %912 = vmatpush.msra.mxu0 %v1348_v43 }
 0x347   : > { %1258 = vmatmul.msk.f32.gmra.mxu0 %vm168_vm1, %v610_v6  ;;  %v1432_v6 = vld [vmem:[%s1859_s1 + $0x78] sm:$0xff]  }
 0x348   : > { %v1385_v8 = vunpack.c.h.bf16 %v1432_v6 }
 0x34a   : > { %955 = vmatpush.msra.mxu2 %v1385_v8 }
 0x3bc   : > { %v731_v7 = vpop.f32.mrf.mxu0 }
 0x3bd   : > { %v737_v9 = vmul.f32 1.442695, %v731_v7  ;;  %v1431_v7 = vld [vmem:[%s1859_s1 + $0x70] sm:$0xff]  }
 0x3bf   : > { %1469 = vpow2.f32 %v737_v9  ;;  %v1384_v9 = vunpack.c.l.bf16 %v1432_v6 }
 0x3c1   : > { %956 = vmatpush.msra.mxu2 %v1384_v9 }
 0x3c4   : > { %v734_v10 = vpop.f32.mrf.mxu0 }
 0x3c5   : > { %v1470_v11 = vpop.eup %1469  ;;  %v739_v13 = vmul.f32 1.442695, %v734_v10 }
 0x3c6   : > { %v741_v14 = vmul.f32 %v1470_v11, %v1237_v12  ;;  %v1381_v11 = vunpack.c.h.bf16 %v1431_v7 }
 0x3c7   : > { %1471 = vpow2.f32 %v739_v13  ;;  %v1430_v13 = vld [vmem:[%s1859_s1 + $0x68] sm:$0xff]  }
 0x3c8   : > { %1259 = vmatmul.msk.f32.vlgmr.msra.gmra.mxu3 %vm299_vm2, %v741_v14  ;;  %v1380_v14 = vunpack.c.l.bf16 %v1431_v7  ;;  %957 = vmatpush.msra.mxu2 %v1381_v11 }
 0x3ca   : > { %958 = vmatpush.msra.mxu2 %v1380_v14 }
 0x3cd   : > { %v1472_v16 = vpop.eup %1471 }
 0x3ce   : > { %v742_v19 = vmul.f32 %v1472_v16, %v1238_v17 }
 0x3d0   : > { %1260 = vmatmul.msk.f32.gmra.mxu3 %vm299_vm2, %v742_v19  ;;  %v1377_v19 = vunpack.c.h.bf16 %v1430_v13 }
 0x3d2   : > { %959 = vmatpush.msra.mxu2 %v1377_v19 }
 0x3d8   : > { %1261 = vmatmul.msk.f32.vlgmr.msrb.gmra.mxu3 %vm249_vm0, %v1237_v12 }
 0x3e0   : > { %1262 = vmatmul.msk.f32.gmra.mxu3 %vm249_vm0, %v1238_v17 }
 0x44b   : > { %v766_v20 = vpop.f32.mrf.mxu3 }
 0x44c   : > { %v772_v22 = vsel %vm168_vm1, %v766_v20, 0.0 }
 0x453   : > { %v769_v21 = vpop.f32.mrf.mxu3 }
 0x454   : > { %v773_v23 = vsel %vm168_vm1, %v769_v21, 0.0 }
 0x455   : > { %v774_v26 = vadd.f32 %v773_v23, %v772_v22  ;;  %v1376_v22 = vunpack.c.l.bf16 %v1430_v13 }
 0x457   : > { %v775_v31 = vrot.slane %v774_v26, 4  ;;  %960 = vmatpush.msra.mxu2 %v1376_v22  ;;  %v1437_v22 = vld [vmem:[%s1859_s1 + $0x100] sm:$0xff]  }
 0x459   : > { %v776_v34 = vadd.f32 %v775_v31, %v774_v26  ;;  %v1428_v31 = vld [vmem:[%s1859_s1 + $0x58] sm:$0xff]  }
 0x45b   : > { %v777_v36 = vrot.slane %v776_v34, 2  ;;  %v815_v51 = vpop.f32.mrf.mxu3 }
 0x45d   : > { %v778_v39 = vadd.f32 %v777_v36, %v776_v34 }
 0x45f   : > { %v779_v47 = vrot.slane %v778_v39, 1 }
 0x461   : > { %v780_v49 = vadd.f32 %v779_v47, %v778_v39 }
 0x463   : > { %vm781_vm15 = vcmp.eq.f32.partialorder %v780_v49, 0.0  ;;  %v818_v25 = vpop.f32.mrf.mxu3 }
 0x464   : > { %v782_v45 = vsel %vm781_vm15, 1.0, %v780_v49 }
 0x465   : > { %1473 = vrcp.f32 %v782_v45  ;;  %v1369_v45 = vunpack.c.h.bf16 %v1428_v31 }
 0x466   : > { %1475 = vrcp.f32 %v1496_v53 }
 0x46b   : > { %v1474_v44 = vpop.eup %1473 }
 0x46c   : > { %v784_v52 = vmul.f32 %v1474_v44, %v766_v20  ;;  %v785_v55 = vmul.f32 %v1474_v44, %v769_v21  ;;  %v1476_v50 = vpop.eup %1475  ;;  %v1429_v20 = vld [vmem:[%s1859_s1 + $0x60] sm:$0xff]   ;;  %v1427_v44 = vld [vmem:[%s1859_s1 + $0x50] sm:$0xff]  }
 0x46d   : > { %v832_v54 = vmul.f32 32.0, %v1476_v50  ;;  %vm836_vm2 = vweird.f32 %v1476_v50  ;;  %v1373_v26 = vunpack.c.h.bf16 %v1429_v20  ;;  %v1372_v36 = vunpack.c.l.bf16 %v1429_v20 }
 0x46e   : > { %v821_v56 = vmul.f32 %v815_v51, %v784_v52  ;;  %v822_v46 = vmul.f32 %v818_v25, %v785_v55  ;;  %v876_v51 = vperm.slane %v1657_v60, 5  ;;  %v879_v25 = vperm.slane %v1657_v60, 6 }
 0x46f   : > { %v833_v61 = vsub.f32 1.0, %v832_v54  ;;  %961 = vmatpush.msra.mxu2 %v1373_v26  ;;  %v1405_v26 = vunpack.c.h.bf16 %v1437_v22 }
 0x470   : > { %v823_v24 = vadd.f32 %v821_v56, %v1694_v18  ;;  %v824_v57 = vadd.f32 %v822_v46, %v1698_v29  ;;  %v1368_v56 = vunpack.c.l.bf16 %v1428_v31 }
 0x471   : > { %v834_v62 = vmul.f32 %v1476_v50, %v833_v61  ;;  %962 = vmatpush.msra.mxu2 %v1372_v36  ;;  %v1433_v36 = vld [vmem:[%s1859_s1 + $0x80] sm:$0xff]  }
 0x472   : > { %v825_v48 = vsel %vm168_vm1, %v823_v24, 0.0  ;;  %v828_v59 = vsel %vm168_vm1, %v824_v57, 0.0 }
 0x473   : > { %826 = vadd.xlane.f32.xlu2 %v825_v48  ;;  %v835_v63 = vadd.f32 %v1476_v50, %v834_v62  ;;  %963 = vmatpush.msra.mxu2 %v1369_v45  ;;  %v1365_v48 = vunpack.c.h.bf16 %v1427_v44  ;;  %v1388_v45 = vunpack.c.l.bf16 %v1433_v36 }
 0x475   : > { %v1761_v0 = vsel %vm836_vm2, %v1476_v50, %v835_v63  ;;  %964 = vmatpush.msra.mxu2 %v1368_v56  ;;  %v1364_v50 = vunpack.c.l.bf16 %v1427_v44 }
 0x477   : > { %965 = vmatpush.msra.mxu2 %v1365_v48 }
 0x479   : > { %966 = vmatpush.msra.mxu2 %v1364_v50 }
 0x47b   : > { %829 = vadd.xlane.f32.xlu2 %v828_v59  ;;  %v1426_v59 = vld [vmem:[%s1859_s1 + $0x48] sm:$0xff]  }
 0x47c   : > { %v1361_v62 = vunpack.c.h.bf16 %v1426_v59 }
 0x47e   : > { %967 = vmatpush.msra.mxu2 %v1361_v62 }
 0x4e6   : > { %v827_v18 = vpop.xlane.xlu2 %826 }
 0x4e7   : > { %v838_v27 = vmul.f32 %v1761_v0, %v827_v18 }
 0x4e9   : > { %v1764_v28 = vsub.f32 %v823_v24, %v838_v27 }
 0x4eb   : > { %v842_v29 = vmul.f32 %v1764_v28, %v1764_v28 }
 0x4ed   : > { %v844_v30 = vsel %vm168_vm1, %v842_v29, 0.0  ;;  %v1360_v29 = vunpack.c.l.bf16 %v1426_v59 }
 0x4ee   : > { %845 = vadd.xlane.f32.xlu0 %v844_v30  ;;  %v830_v32 = vpop.xlane.xlu2 %829  ;;  %v1425_v30 = vld [vmem:[%s1859_s1 + $0x40] sm:$0xff]  }
 0x4ef   : > { %v839_v33 = vmul.f32 %v1761_v0, %v830_v32  ;;  %968 = vmatpush.msra.mxu2 %v1360_v29  ;;  %v1357_v32 = vunpack.c.h.bf16 %v1425_v30 }
 0x4f1   : > { %v1770_v35 = vsub.f32 %v824_v57, %v839_v33  ;;  %969 = vmatpush.msra.mxu2 %v1357_v32  ;;  %v1356_v33 = vunpack.c.l.bf16 %v1425_v30 }
 0x4f3   : > { %v843_v1 = vmul.f32 %v1770_v35, %v1770_v35  ;;  %970 = vmatpush.msra.mxu2 %v1356_v33 }
 0x4f5   : > { %v847_v38 = vsel %vm168_vm1, %v843_v1, 0.0  ;;  %v890_v1 = vperm.slane %v1657_v60, 3  ;;  %1126 = vmatpush.msrb.mxu2 %v1405_v26 }
 0x4f6   : > { %848 = vadd.xlane.f32.xlu1 %v847_v38 }
 0x561   : > { %v846_v3 = vpop.xlane.xlu0 %845 }
 0x562   : > { %v850_v4 = vmul.f32 %v846_v3, %v1761_v0 }
 0x564   : > { %v852_v5 = vadd.f32 1e-05, %v850_v4 }
 0x566   : > { %1477 = vrsqrt.f32 %v852_v5  ;;  %vm860_vm4 = vweird.f32 %v852_v5 }
 0x569   : > { %v849_v10 = vpop.xlane.xlu1 %848 }
 0x56a   : > { %v851_v12 = vmul.f32 %v849_v10, %v1761_v0 }
 0x56c   : > { %v1478_v15 = vpop.eup %1477  ;;  %v853_v16 = vadd.f32 1e-05, %v851_v12 }
 0x56d   : > { %v855_v17 = vmul.f32 %v1478_v15, %v852_v5  ;;  %vm861_vm3 = vweird.f32 %v1478_v15 }
 0x56e   : > { %1479 = vrsqrt.f32 %v853_v16  ;;  %vm862_vm5 = vmor %vm860_vm4, %vm861_vm3  ;;  %vm870_vm7 = vweird.f32 %v853_v16 }
 0x56f   : > { %v856_v21 = vmul.f32 %v1478_v15, %v855_v17 }
 0x571   : > { %v857_v23 = vmul.f32 0.5, %v856_v21  ;;  %v1434_v21 = vld [vmem:[%s1859_s1 + $0x88] sm:$0xff]  }
 0x572   : > { %v1392_v31 = vunpack.c.l.bf16 %v1434_v21 }
 0x573   : > { %v858_v34 = vsub.f32 1.5, %v857_v23  ;;  %v1393_v23 = vunpack.c.h.bf16 %v1434_v21 }
 0x574   : > { %v1480_v39 = vpop.eup %1479 }
 0x575   : > { %v859_v47 = vmul.f32 %v1478_v15, %v858_v34  ;;  %v865_v49 = vmul.f32 %v1480_v39, %v853_v16  ;;  %vm871_vm6 = vweird.f32 %v1480_v39  ;;  %1057 = vmatpush.msra.mxu3 %v1393_v23  ;;  %v1404_v34 = vunpack.c.l.bf16 %v1437_v22 }
 0x576   : > { %vm872_vm8 = vmor %vm870_vm7, %vm871_vm6 }
 0x577   : > { %v863_v52 = vsel %vm862_vm5, %v1478_v15, %v859_v47  ;;  %v866_v55 = vmul.f32 %v1480_v39, %v865_v49  ;;  %1058 = vmatpush.msra.mxu3 %v1392_v31  ;;  %1127 = vmatpush.msrb.mxu2 %v1404_v34  ;;  %v1389_v47 = vunpack.c.h.bf16 %v1433_v36 }
 0x578   : > { %v874_v24 = vmul.f32 %v863_v52, %v1764_v28 }
 0x579   : > { %v867_v46 = vmul.f32 0.5, %v866_v55  ;;  %1059 = vmatpush.msra.mxu3 %v1389_v47 }
 0x57a   : > { %v877_v57 = vmul.f32 %v876_v51, %v874_v24 }
 0x57b   : > { %v868_v53 = vsub.f32 1.5, %v867_v46  ;;  %1060 = vmatpush.msra.mxu3 %v1388_v45 }
 0x57c   : > { %v880_v54 = vadd.f32 %v879_v25, %v877_v57 }
 0x57d   : > { %v869_v61 = vmul.f32 %v1480_v39, %v868_v53  ;;  %1438 = vmatpush.msrb.mxu3 %v1405_v26 }
 0x57e   : > { %1263 = vmatmul.msk.f32.vlgmr.msra.gmra.mxu0 %vm168_vm1, %v880_v54 }
 0x57f   : > { %v873_v63 = vsel %vm872_vm8, %v1480_v39, %v869_v61  ;;  %v1436_v39 = vld [vmem:[%s1859_s1 + $0xf8] sm:$0xff]   ;;  %1439 = vmatpush.msrb.mxu3 %v1404_v34 }
 0x580   : > { %v875_v18 = vmul.f32 %v873_v63, %v1770_v35  ;;  %v1401_v49 = vunpack.c.h.bf16 %v1436_v39  ;;  %v1024_v63 = vperm.slane %v1657_v60, 7 }
 0x582   : > { %v878_v27 = vmul.f32 %v876_v51, %v875_v18  ;;  %1128 = vmatpush.msrb.mxu2 %v1401_v49  ;;  %v1400_v51 = vunpack.c.l.bf16 %v1436_v39  ;;  %1440 = vmatpush.msrb.mxu3 %v1401_v49 }
 0x584   : > { %v881_v28 = vadd.f32 %v879_v25, %v878_v27  ;;  %1129 = vmatpush.msrb.mxu2 %v1400_v51  ;;  %1441 = vmatpush.msrb.mxu3 %v1400_v51 }
 0x586   : > { %1264 = vmatmul.msk.f32.gmra.mxu0 %vm168_vm1, %v881_v28 }
 0x5fb   : > { %v914_v38 = vpop.f32.mrf.mxu0 }
 0x5fc   : > { %v915_v2 = vadd.f32 %v914_v38, %v890_v1 }
 0x5fe   : > { %v920_v35 = vmax.f32 %v915_v2, 0.0 }
 0x600   : > { %971 = vmatmul.f32.vlgmr.msra.gmra.mxu2 %v920_v35  ;;  %v1435_v35 = vld [vmem:[%s1859_s1 + $0x90] sm:$0xff]  }
 0x603   : > { %v917_v37 = vpop.f32.mrf.mxu0 }
 0x604   : > { %v918_v40 = vadd.f32 %v917_v37, %v890_v1  ;;  %v1397_v37 = vunpack.c.h.bf16 %v1435_v35 }
 0x606   : > { %v921_v41 = vmax.f32 %v918_v40, 0.0  ;;  %1095 = vmatpush.msrb.mxu0 %v1397_v37  ;;  %v1396_v40 = vunpack.c.l.bf16 %v1435_v35 }
 0x608   : > { %974 = vmatmul.f32.gmra.mxu2 %v921_v41  ;;  %1096 = vmatpush.msrb.mxu0 %v1396_v40 }
 0x683   : > { %v972_v43 = vpop.f32.mrf.mxu2 }
 0x684   : > { %v973_v3 = vadd.f32 %v972_v43, %v954_v42 }
 0x686   : > { %v978_v4 = vadd.f32 %v973_v3, %v880_v54  ;;  %v1277_v54 = vunpack.c.h.bf16 %v1654_v58 }
 0x688   : > { %v980_v5 = vsel %vm168_vm1, %v978_v4, 0.0  ;;  %v1038_v41 = vperm.slane %v1277_v54, 1 }
 0x689   : > { %981 = vadd.xlane.f32.xlu2 %v980_v5 }
 0x68b   : > { %v975_v6 = vpop.f32.mrf.mxu2 }
 0x68c   : > { %v976_v7 = vadd.f32 %v975_v6, %v954_v42 }
 0x68e   : > { %v979_v8 = vadd.f32 %v976_v7, %v881_v28  ;;  %v1027_v28 = vperm.slane %v1277_v54, 0 }
 0x690   : > { %v983_v9 = vsel %vm168_vm1, %v979_v8, 0.0 }
 0x691   : > { %984 = vadd.xlane.f32.xlu0 %v983_v9  ;;  %v1074_v9 = vperm.slane %v1277_v54, 2 }
 0x6fc   : > { %v982_v10 = vpop.xlane.xlu2 %981 }
 0x6fd   : > { %v986_v11 = vmul.f32 %v982_v10, %v1761_v0 }
 0x6ff   : > { %v988_v12 = vsub.f32 %v978_v4, %v986_v11 }
 0x701   : > { %v990_v13 = vmul.f32 %v988_v12, %v988_v12 }
 0x703   : > { %v992_v14 = vsel %vm168_vm1, %v990_v13, 0.0 }
 0x704   : > { %v985_v15 = vpop.xlane.xlu0 %984  ;;  %993 = vadd.xlane.f32.xlu2 %v992_v14 }
 0x705   : > { %v987_v16 = vmul.f32 %v985_v15, %v1761_v0 }
 0x707   : > { %v1820_v17 = vsub.f32 %v979_v8, %v987_v16 }
 0x709   : > { %v991_v19 = vmul.f32 %v1820_v17, %v1820_v17 }
 0x70b   : > { %v995_v20 = vsel %vm168_vm1, %v991_v19, 0.0 }
 0x70c   : > { %996 = vadd.xlane.f32.xlu0 %v995_v20 }
 0x777   : > { %v994_v44 = vpop.xlane.xlu2 %993 }
 0x778   : > { %v998_v52 = vmul.f32 %v994_v44, %v1761_v0 }
 0x77a   : > { %v1000_v55 = vadd.f32 1e-05, %v998_v52 }
 0x77c   : > { %1481 = vrsqrt.f32 %v1000_v55  ;;  %vm1008_vm10 = vweird.f32 %v1000_v55 }
 0x77f   : > { %v997_v56 = vpop.xlane.xlu0 %996 }
 0x780   : > { %v999_v24 = vmul.f32 %v997_v56, %v1761_v0 }
 0x782   : > { %v1482_v25 = vpop.eup %1481  ;;  %v1001_v46 = vadd.f32 1e-05, %v999_v24 }
 0x783   : > { %v1003_v48 = vmul.f32 %v1482_v25, %v1000_v55  ;;  %vm1009_vm9 = vweird.f32 %v1482_v25 }
 0x784   : > { %1483 = vrsqrt.f32 %v1001_v46  ;;  %vm1010_vm11 = vmor %vm1008_vm10, %vm1009_vm9  ;;  %vm1018_vm13 = vweird.f32 %v1001_v46 }
 0x785   : > { %v1004_v57 = vmul.f32 %v1482_v25, %v1003_v48 }
 0x787   : > { %v1005_v59 = vmul.f32 0.5, %v1004_v57 }
 0x789   : > { %v1006_v53 = vsub.f32 1.5, %v1005_v59 }
 0x78a   : > { %v1484_v50 = vpop.eup %1483 }
 0x78b   : > { %v1007_v61 = vmul.f32 %v1482_v25, %v1006_v53  ;;  %v1013_v62 = vmul.f32 %v1484_v50, %v1001_v46  ;;  %vm1019_vm12 = vweird.f32 %v1484_v50 }
 0x78c   : > { %vm1020_vm14 = vmor %vm1018_vm13, %vm1019_vm12 }
 0x78d   : > { %v1011_v18 = vsel %vm1010_vm11, %v1482_v25, %v1007_v61  ;;  %v1014_v27 = vmul.f32 %v1484_v50, %v1013_v62 }
 0x78e   : > { %v1022_v0 = vmul.f32 %v1011_v18, %v988_v12 }
 0x78f   : > { %v1015_v29 = vmul.f32 0.5, %v1014_v27 }
 0x790   : > { %v1025_v30 = vmul.f32 %v1024_v63, %v1022_v0 }
 0x791   : > { %v1016_v32 = vsub.f32 1.5, %v1015_v29 }
 0x792   : > { %v1028_v33 = vadd.f32 %v1027_v28, %v1025_v30 }
 0x793   : > { %v1017_v1 = vmul.f32 %v1484_v50, %v1016_v32 }
 0x794   : > { %1265 = vmatmul.msk.f32.vlgmr.msra.gmra.mxu3 %vm168_vm1, %v1028_v33  ;;  %1269 = vmatmul.msk.f32.vlgmr.msrb.gmra.mxu2 %vm168_vm1, %v1028_v33 }
 0x795   : > { %v1021_v58 = vsel %vm1020_vm14, %v1484_v50, %v1017_v1 }
 0x796   : > { %v1023_v60 = vmul.f32 %v1021_v58, %v1820_v17 }
 0x798   : > { %v1026_v38 = vmul.f32 %v1024_v63, %v1023_v60 }
 0x79a   : > { %v1029_v2 = vadd.f32 %v1027_v28, %v1026_v38 }
 0x79c   : > { %1266 = vmatmul.msk.f32.gmra.mxu3 %vm168_vm1, %v1029_v2 }
 0x7a4   : > { %1270 = vmatmul.msk.f32.vlgmr.msrb.gmra.mxu3 %vm168_vm1, %v1029_v2 }
 0x817   : > { %v1062_v42 = vpop.f32.mrf.mxu3  ;;  %v1131_v43 = vpop.f32.mrf.mxu2 }
 0x818   : > { %v1063_v3 = vadd.f32 %v1062_v42, %v1038_v41  ;;  %1137 = vst [vmem:[%s143_s6 + $0x10] sm:$0xff] %v1131_v43 }
 0x81a   : > { %v1068_v4 = vmax.f32 %v1063_v3, 0.0 }
 0x81c   : > { %1267 = vmatmul.msk.f32.vlgmr.msrb.gmra.mxu0 %vm249_vm0, %v1068_v4 }
 0x81f   : > { %v1065_v5 = vpop.f32.mrf.mxu3 }
 0x820   : > { %v1066_v6 = vadd.f32 %v1065_v5, %v1038_v41 }
 0x822   : > { %v1069_v7 = vmax.f32 %v1066_v6, 0.0 }
 0x824   : > { %1268 = vmatmul.msk.f32.gmra.mxu0 %vm249_vm0, %v1069_v7 }
 0x827   : > { %v1134_v8 = vpop.f32.mrf.mxu3 }
 0x828   : > { %1138 = vst [vmem:[%s143_s6 + $0x18] sm:$0xff] %v1134_v8 }
 0x899   : > { %v1098_v10 = vpop.f32.mrf.mxu0 }
 0x89a   : > { %v1099_v11 = vadd.f32 %v1098_v10, %v1074_v9 }
 0x89c   : > { %1104 = vst [vmem:[%s143_s6] sm:$0xff] %v1099_v11 }
 0x8a1   : > { %v1101_v12 = vpop.f32.mrf.mxu0 }
 0x8a2   : > { %v1102_v13 = vadd.f32 %v1101_v12, %v1074_v9 }
 0x8a4   : > { %1105 = vst [vmem:[%s143_s6 + $0x8] sm:$0xff] %v1102_v13 }
 0x8a5 PF: > { %s12_s9 = sadd.s32 1, %s1491_s9  }
 0x8a6   : > { %p9_p4 = scmp.ge.s32.totalorder %s12_s9, 6  }
 0x8a8   :  { %11 = sbr.rel (!%p9_p4) target bundleno = 1 (0x1), region = 58 }

</bundles_post_ra>
